<compile_context>
chip_gen: v7x
topology: tpu7x:2x2x1
jax: 0.10.0
libtpu: 0.0.40
codegen_flags: <defaults>
</compile_context>

<pallas_src>
import functools
import math

import jax
import jax.numpy as jnp
from jax.experimental import pallas as pl
from jax.experimental.pallas import tpu as pltpu


# ----------------------------------------------------------------------------
# In-kernel helpers
# ----------------------------------------------------------------------------
def _layer_norm(x, gamma, beta, eps=1e-5):
    # PyTorch nn.LayerNorm: biased variance over the last dim, eps inside sqrt.
    mu = jnp.mean(x, axis=-1, keepdims=True)
    var = jnp.mean((x - mu) ** 2, axis=-1, keepdims=True)
    return (x - mu) * jax.lax.rsqrt(var + eps) * gamma + beta


def _mm(a, b):
    # MXU matmul: LHS cast to the weight dtype (bf16 weights -> bf16 MXU path
    # on v6e/v7x), f32 accumulation.
    return jnp.dot(a.astype(b.dtype), b, preferred_element_type=jnp.float32)


# ----------------------------------------------------------------------------
# Fused forward kernel: embedding + all encoder layers + final LayerNorm/ReLU
# Grid: (batch_shards, num_layers); activation carried in VMEM across layers.
# ----------------------------------------------------------------------------
def fused_transformer_kernel(
        x_ref, emb_w_ref, pos_ref,
        wqkv_ref, bqkv_ref, wo_ref, bo_ref,
        g1_ref, be1_ref, g2_ref, be2_ref,
        w1_ref, w2_ref, gf_ref, bf_ref,
        out_ref, attn_ref,
        act_ref, omrg_ref,
        *, N, Bs, L, n_heads, d_keys, attn_dtype):
    layer = pl.program_id(1)
    last_layer = pl.num_programs(1) - 1
    H = n_heads
    dk = d_keys
    hdk = H * dk
    D = act_ref.shape[-1]
    M = N * Bs * L                      # total matmul rows (nodes * batch * seq)

    # ---- layer 0: DataEmbedding (stand-in) -> VMEM-resident activation ------
    # TODO(synk): replace stand-in DataEmbedding (value linear + sinusoidal PE,
    # embedding bias pre-folded into pos_ref) once its real definition is known.
    @pl.when(layer == 0)
    def _():
        xc = x_ref[...].astype(jnp.float32).reshape(M, x_ref.shape[-1])
        emb = _mm(xc, emb_w_ref[...])                            # (M, D)
        emb = emb.reshape(N * Bs, L, D) + pos_ref[...][None]     # + (bias + PE)
        act_ref[...] = emb.reshape(N, Bs * L, D)

    x = act_ref[...]                                             # (N, Bs*L, D)
    x_flat = x.reshape(M, D)

    # ---- node-specific fused Q/K/V projection (batched einsum over nodes) ---
    wqkv = wqkv_ref[0]                                           # (N, D, 3*hdk) bf16
    qkv = jnp.einsum('nmd,ndk->nmk', x.astype(wqkv.dtype), wqkv,
                     preferred_element_type=jnp.float32) + bqkv_ref[0]
    qkv = qkv.reshape(N * Bs, L, 3 * hdk)                        # (NB, L, 3*hdk)

    # ---- head split: layout-preserving lane slices + stack (no relayout) ----
    def heads(base):
        hs = [qkv[:, :, base + h * dk: base + (h + 1) * dk] for h in range(H)]
        return jnp.stack(hs, axis=1).reshape(N * Bs * H, L, dk)

    q = heads(0)                 # 1/sqrt(dk) already folded into Wq/bq host-side
    k = heads(hdk)
    v = heads(2 * hdk)

    # ---- attention, batched over (node, batch, head); exact softmax ---------
    s = jnp.einsum('zle,zse->zls', q, k,
                   preferred_element_type=jnp.float32)           # (Z, L, L)
    s = s - jnp.max(s, axis=-1, keepdims=True)
    ex = jnp.exp(s)
    p = ex / jnp.sum(ex, axis=-1, keepdims=True)                 # exact normalize

    # attention maps -> lane-dense HBM slab (B, L, N*H*L): per-(node, head)
    # tiles placed with static lane-slice stores (layout-safe).
    p5 = p.reshape(N, Bs, H, L, L)
    for n in range(N):
        for h in range(H):
            j = n * H + h
            attn_ref[0, :, :, j * L:(j + 1) * L] = p5[n, :, h].astype(attn_dtype)

    o = jnp.einsum('zls,zsd->zld', p, v,
                   preferred_element_type=jnp.float32)           # (Z, L, dk)

    # ---- un-split heads via VMEM scratch, then ONE hdk-deep output matmul ---
    o4 = o.reshape(N * Bs, H, L, dk)
    for h in range(H):
        omrg_ref[:, h * dk:(h + 1) * dk] = o4[:, h].reshape(M, dk)
    o_flat = omrg_ref[...]                                       # (M, hdk)
    proj = _mm(o_flat, wo_ref[0]) + bo_ref[0]                    # (M, D)

    # ---- residual + LayerNorm1 -----------------------------------------------
    x1 = _layer_norm(x_flat + proj, g1_ref[0], be1_ref[0])

    # ---- FFN: 1x1 convs == per-position linears (bias=False), ReLU ----------
    y = jnp.maximum(_mm(x1, w1_ref[0]), 0.0)
    y = _mm(y, w2_ref[0])

    # ---- residual + LayerNorm2 -> next layer's resident activation ----------
    x2 = _layer_norm(x1 + y, g2_ref[0], be2_ref[0])
    act_ref[...] = x2.reshape(N, Bs * L, D)

    # ---- last layer: final LayerNorm + ReLU -> lane-dense (B, L, N*D) slab ---
    @pl.when(layer == last_layer)
    def _():
        out = jnp.maximum(_layer_norm(x2, gf_ref[...], bf_ref[...]), 0.0)
        o3 = out.reshape(N, Bs * L, D)
        for n in range(N):
            out_ref[:, :, n * D:(n + 1) * D] = o3[n].reshape(Bs, L, D)


# ----------------------------------------------------------------------------
# Wrapper: one pallas_call for the whole forward pass (eval mode).
# ----------------------------------------------------------------------------
def transformer_forward(x, params, *, n_heads, batch_shards=1,
                        attn_dtype=jnp.bfloat16):
    B, N, L, C = x.shape
    D = params["emb_w"].shape[1]
    wqkv = params["wqkv"]                           # (num_layers, N, D, 3*hdk)
    num_layers = wqkv.shape[0]
    hdk = wqkv.shape[-1] // 3
    d_keys = hdk // n_heads
    d_ff = params["w1"].shape[-1]
    H = n_heads

    assert B % batch_shards == 0
    Bs = B // batch_shards

    # ---- host-side folds (free wins, done once per call) ---------------------
    scale = 1.0 / math.sqrt(d_keys)
    wqkv = wqkv.at[..., :hdk].multiply(scale)       # fold softmax scale into Wq
    bqkv = params["bqkv"].at[..., :hdk].multiply(scale)
    pos_b = params["pos"] + params["emb_b"]         # (L, D): emb bias folded in

    # Node-major input (one-time XLA transpose outside the kernel).
    x_t = jnp.transpose(x, (1, 0, 2, 3))            # (N, B, L, C)

    kernel = functools.partial(fused_transformer_kernel,
                               N=N, Bs=Bs, L=L, n_heads=H, d_keys=d_keys,
                               attn_dtype=attn_dtype)

    def shared(shape):
        return pl.BlockSpec(shape, lambda p, l: (0,) * len(shape))

    def per_layer(shape):
        return pl.BlockSpec((1,) + shape, lambda p, l: (l,) + (0,) * len(shape))

    in_specs = [
        pl.BlockSpec((N, Bs, L, C), lambda p, l: (0, p, 0, 0)),  # x (node-major)
        shared((C, D)),                                  # embedding value weight
        shared((L, D)),                                  # positional + emb bias
        per_layer((N, D, 3 * hdk)),                      # fused per-node Wqkv
        per_layer((N, 1, 3 * hdk)),                      # fused per-node bqkv
        per_layer((hdk, D)),                             # Wo (single hdk-deep matmul)
        per_layer((1, D)),                               # bo
        per_layer((1, D)), per_layer((1, D)),            # norm1 gamma / beta
        per_layer((1, D)), per_layer((1, D)),            # norm2 gamma / beta
        per_layer((D, d_ff)),                            # conv1 1x1 (bias=False)
        per_layer((d_ff, D)),                            # conv2 1x1 (bias=False)
        shared((1, D)), shared((1, D)),                  # final norm gamma / beta
    ]
    out_specs = (
        # enc_out block is resident in VMEM across the layer axis; only the
        # value written at the last layer is flushed (one dense store / shard).
        pl.BlockSpec((Bs, L, N * D), lambda p, l: (p, 0, 0)),
        pl.BlockSpec((1, Bs, L, N * H * L), lambda p, l: (l, p, 0, 0)),
    )
    out_shape = (
        jax.ShapeDtypeStruct((B, L, N * D), jnp.float32),
        jax.ShapeDtypeStruct((num_layers, B, L, N * H * L), attn_dtype),
    )

    out_flat, attn_flat = pl.pallas_call(
        kernel,
        grid=(batch_shards, num_layers),
        in_specs=in_specs,
        out_specs=out_specs,
        out_shape=out_shape,
        scratch_shapes=[
            pltpu.VMEM((N, Bs * L, D), jnp.float32),      # resident activation
            pltpu.VMEM((N * Bs * L, hdk), jnp.float32),   # head re-merge buffer
        ],
        compiler_params=pltpu.CompilerParams(
            # batch shards parallel (v7x 2-TC split), layers sequential.
            dimension_semantics=("parallel", "arbitrary"),
            # 48 MiB: above the 16/32 MiB scoped defaults, within v7x's 64 MiB.
            vmem_limit_bytes=48 * 1024 * 1024),
    )(x_t, params["emb_w"], pos_b, wqkv, bqkv, params["wo"], params["bo"],
      params["g1"], params["be1"], params["g2"], params["be2"],
      params["w1"], params["w2"], params["norm_g"], params["norm_b"])

    # Undo the lane-dense packing (wrapper-side layout plumbing only).
    out = out_flat.reshape(B, L, N, D).transpose(0, 2, 1, 3)         # (B, N, L, D)
    attns = attn_flat.reshape(num_layers, B, L, N, H, L)
    attns = attns.transpose(0, 1, 3, 4, 2, 5)                        # (lay,B,N,H,L,S)
    return out, attns


# ----------------------------------------------------------------------------
# Parameter construction (deterministic, synthetic)
# ----------------------------------------------------------------------------
def make_params(key, *, num_nodes, in_channels, d_model, n_heads, num_layers,
                seg_len):
    d_keys = d_model // n_heads
    hdk = n_heads * d_keys
    d_ff = 4 * d_model
    keys = iter(jax.random.split(key, 16))

    def rnd(shape, scale=0.1):
        return jax.random.normal(next(keys), shape, jnp.float32) * scale

    bf16 = jnp.bfloat16

    # Sinusoidal positional embedding (L, d_model).
    pos_idx = jnp.arange(seg_len, dtype=jnp.float32)[:, None]
    dim_idx = jnp.arange(d_model, dtype=jnp.float32)[None, :]
    angle = pos_idx / jnp.power(10000.0, (2.0 * jnp.floor(dim_idx / 2.0)) / d_model)
    pos = jnp.where(dim_idx % 2 == 0, jnp.sin(angle), jnp.cos(angle))

    return {
        # Matmul weights shipped in bf16 (bf16 MXU path, half the weight DMA);
        # biases / norms / PE stay f32 (VPU math is f32 on all generations).
        "emb_w": rnd((in_channels, d_model)).astype(bf16),
        "emb_b": rnd((1, d_model)),
        "pos": pos.astype(jnp.float32),
        "norm_g": jnp.ones((1, d_model), jnp.float32),
        "norm_b": jnp.zeros((1, d_model), jnp.float32),
        # Per-layer, per-node fused QKV (MyLinear: node-specific Linear + bias).
        "wqkv": rnd((num_layers, num_nodes, d_model, 3 * hdk)).astype(bf16),
        "bqkv": rnd((num_layers, num_nodes, 1, 3 * hdk)),
        # Shared output projection, stored (hdk, d_model) for one deep matmul.
        "wo": rnd((num_layers, hdk, d_model)).astype(bf16),
        "bo": rnd((num_layers, 1, d_model)),
        "g1": jnp.ones((num_layers, 1, d_model), jnp.float32),
        "be1": jnp.zeros((num_layers, 1, d_model), jnp.float32),
        "g2": jnp.ones((num_layers, 1, d_model), jnp.float32),
        "be2": jnp.zeros((num_layers, 1, d_model), jnp.float32),
        "w1": rnd((num_layers, d_model, d_ff)).astype(bf16),   # conv1 1x1
        "w2": rnd((num_layers, d_ff, d_model)).astype(bf16),   # conv2 1x1
    }


# ----------------------------------------------------------------------------
if __name__ == "__main__":
    # Small shapes consistent with the module's forward.
    B, N, L, C = 2, 4, 8, 3                  # batch, num_nodes, seg_len, in_channels
    d_model, n_heads, num_layers = 32, 4, 2

    key = jax.random.PRNGKey(0)
    kx, kp = jax.random.split(key)
    x = jax.random.normal(kx, (B, N, L, C), jnp.float32)

    params = make_params(kp, num_nodes=N, in_channels=C, d_model=d_model,
                         n_heads=n_heads, num_layers=num_layers, seg_len=L)

    # batch_shards=2 exposes a parallel grid axis for v7x's two TensorCores;
    # on single-TC chips it is just two cheap sequential shards.
    fwd = jax.jit(functools.partial(transformer_forward, n_heads=n_heads,
                                    batch_shards=2))
    enc_out, attns = fwd(x, params)
    jax.block_until_ready((enc_out, attns))

    assert enc_out.shape == (B, N, L, d_model)
    assert attns.shape == (num_layers, B, N, n_heads, L, L)
    print("KERNEL_OK")
</pallas_src>

<mosaic_0001>
module attributes {stable_mosaic.version = 11 : i64} {
  func.func @fused_transformer_kernel(%arg0: i32, %arg1: i32, %arg2: memref<4x1x8x3xf32, #tpu.memory_space<vmem>>, %arg3: memref<3x32xbf16, #tpu.memory_space<vmem>>, %arg4: memref<8x32xf32, #tpu.memory_space<vmem>>, %arg5: memref<1x4x32x96xbf16, #tpu.memory_space<vmem>>, %arg6: memref<1x4x1x96xf32, #tpu.memory_space<vmem>>, %arg7: memref<1x32x32xbf16, #tpu.memory_space<vmem>>, %arg8: memref<1x1x32xf32, #tpu.memory_space<vmem>>, %arg9: memref<1x1x32xf32, #tpu.memory_space<vmem>>, %arg10: memref<1x1x32xf32, #tpu.memory_space<vmem>>, %arg11: memref<1x1x32xf32, #tpu.memory_space<vmem>>, %arg12: memref<1x1x32xf32, #tpu.memory_space<vmem>>, %arg13: memref<1x32x128xbf16, #tpu.memory_space<vmem>>, %arg14: memref<1x128x32xbf16, #tpu.memory_space<vmem>>, %arg15: memref<1x32xf32, #tpu.memory_space<vmem>>, %arg16: memref<1x32xf32, #tpu.memory_space<vmem>>, %arg17: memref<1x8x128xf32, #tpu.memory_space<vmem>>, %arg18: memref<1x1x8x128xbf16, #tpu.memory_space<vmem>>, %arg19: memref<4x8x32xf32, #tpu.memory_space<vmem>>, %arg20: memref<32x32xf32, #tpu.memory_space<vmem>>) attributes {dimension_semantics = [#tpu.dimension_semantics<parallel>, #tpu.dimension_semantics<arbitrary>], iteration_bounds = array<i64: 2, 2>, scalar_prefetch = 0 : i64, scratch_operands = 2 : i64, tpu.core_type = #tpu.core_type<tc>, window_params = [{transform_indices = @transform_0, window_bounds = array<i64: 4, 1, 8, 3>}, {pipeline_mode = #tpu.pipeline_mode<synchronous>, transform_indices = @transform_1, window_bounds = array<i64: 3, 32>}, {pipeline_mode = #tpu.pipeline_mode<synchronous>, transform_indices = @transform_2, window_bounds = array<i64: 8, 32>}, {transform_indices = @transform_3, window_bounds = array<i64: 1, 4, 32, 96>}, {transform_indices = @transform_4, window_bounds = array<i64: 1, 4, 1, 96>}, {transform_indices = @transform_5, window_bounds = array<i64: 1, 32, 32>}, {transform_indices = @transform_6, window_bounds = array<i64: 1, 1, 32>}, {transform_indices = @transform_7, window_bounds = array<i64: 1, 1, 32>}, {transform_indices = @transform_8, window_bounds = array<i64: 1, 1, 32>}, {transform_indices = @transform_9, window_bounds = array<i64: 1, 1, 32>}, {transform_indices = @transform_10, window_bounds = array<i64: 1, 1, 32>}, {transform_indices = @transform_11, window_bounds = array<i64: 1, 32, 128>}, {transform_indices = @transform_12, window_bounds = array<i64: 1, 128, 32>}, {pipeline_mode = #tpu.pipeline_mode<synchronous>, transform_indices = @transform_13, window_bounds = array<i64: 1, 32>}, {pipeline_mode = #tpu.pipeline_mode<synchronous>, transform_indices = @transform_14, window_bounds = array<i64: 1, 32>}, {transform_indices = @transform_15, window_bounds = array<i64: 1, 8, 128>}, {transform_indices = @transform_16, window_bounds = array<i64: 1, 1, 8, 128>}]} {
    %c0_i32 = arith.constant 0 : i32
    %0 = arith.cmpi eq, %arg1, %c0_i32 : i32
    %1 = arith.extui %0 : i1 to i32
    %c0_i32_0 = arith.constant 0 : i32
    %2 = arith.cmpi ne, %1, %c0_i32_0 : i32
    scf.if %2 {
      %c0_116 = arith.constant 0 : index
      %c0_117 = arith.constant 0 : index
      %c0_118 = arith.constant 0 : index
      %c0_119 = arith.constant 0 : index
      %246 = vector.load %arg2[%c0_116, %c0_117, %c0_118, %c0_119] : memref<4x1x8x3xf32, #tpu.memory_space<vmem>>, vector<4x1x8x3xf32>
      %247 = vector.shape_cast %246 : vector<4x1x8x3xf32> to vector<32x3xf32>
      %c0_120 = arith.constant 0 : index
      %c0_121 = arith.constant 0 : index
      %248 = vector.load %arg3[%c0_120, %c0_121] : memref<3x32xbf16, #tpu.memory_space<vmem>>, vector<3x32xbf16>
      %249 = arith.truncf %247 : vector<32x3xf32> to vector<32x3xbf16>
      %cst_122 = arith.constant dense<0.000000e+00> : vector<32x32xf32>
      %250 = tpu.matmul %249, %248, %cst_122 {dimension_numbers = #tpu.dot_dimension_numbers<[1], [0], [0], [1], [0, 0, 1, 1], [], []>} : vector<32x3xbf16>, vector<3x32xbf16>, vector<32x32xf32> -> vector<32x32xf32>
      %251 = vector.shape_cast %250 : vector<32x32xf32> to vector<4x8x32xf32>
      %c0_123 = arith.constant 0 : index
      %c0_124 = arith.constant 0 : index
      %252 = vector.load %arg4[%c0_123, %c0_124] : memref<8x32xf32, #tpu.memory_space<vmem>>, vector<8x32xf32>
      %253 = vector.shape_cast %252 : vector<8x32xf32> to vector<1x8x32xf32>
      %254 = vector.broadcast %253 : vector<1x8x32xf32> to vector<4x8x32xf32>
      %255 = arith.addf %251, %254 : vector<4x8x32xf32>
      %c0_125 = arith.constant 0 : index
      %c0_126 = arith.constant 0 : index
      %c0_127 = arith.constant 0 : index
      %256 = vector.load %arg19[%c0_125, %c0_126, %c0_127] : memref<4x8x32xf32, #tpu.memory_space<vmem>>, vector<4x8x32xf32>
      tpu.vector_store %arg19[%c0_125, %c0_126, %c0_127], %255 {strides = array<i32>} : memref<4x8x32xf32, #tpu.memory_space<vmem>>, vector<4x8x32xf32>,
    } else {
    }
    %c0 = arith.constant 0 : index
    %c0_1 = arith.constant 0 : index
    %c0_2 = arith.constant 0 : index
    %3 = vector.load %arg19[%c0, %c0_1, %c0_2] : memref<4x8x32xf32, #tpu.memory_space<vmem>>, vector<4x8x32xf32>
    %4 = vector.shape_cast %3 : vector<4x8x32xf32> to vector<32x32xf32>
    %c0_3 = arith.constant 0 : index
    %c0_4 = arith.constant 0 : index
    %c0_5 = arith.constant 0 : index
    %c0_6 = arith.constant 0 : index
    %5 = vector.load %arg5[%c0_3, %c0_4, %c0_5, %c0_6] : memref<1x4x32x96xbf16, #tpu.memory_space<vmem>>, vector<1x4x32x96xbf16>
    %6 = vector.shape_cast %5 : vector<1x4x32x96xbf16> to vector<4x32x96xbf16>
    %7 = arith.truncf %3 : vector<4x8x32xf32> to vector<4x8x32xbf16>
    "tpu.trace_start"() <{level = 10 : i32, message = "nmd,ndk->nmk"}> : () -> ()
    %cst = arith.constant dense<0.000000e+00> : vector<4x8x96xf32>
    %8 = tpu.matmul %7, %6, %cst {dimension_numbers = #tpu.dot_dimension_numbers<[2], [1], [1], [2], [0, 0, 0, 1, 1, 2], [0], [0]>} : vector<4x8x32xbf16>, vector<4x32x96xbf16>, vector<4x8x96xf32> -> vector<4x8x96xf32>
    "tpu.trace_stop"() : () -> ()
    %c0_7 = arith.constant 0 : index
    %c0_8 = arith.constant 0 : index
    %c0_9 = arith.constant 0 : index
    %c0_10 = arith.constant 0 : index
    %9 = vector.load %arg6[%c0_7, %c0_8, %c0_9, %c0_10] : memref<1x4x1x96xf32, #tpu.memory_space<vmem>>, vector<1x4x1x96xf32>
    %10 = vector.shape_cast %9 : vector<1x4x1x96xf32> to vector<4x1x96xf32>
    %11 = vector.broadcast %10 : vector<4x1x96xf32> to vector<4x8x96xf32>
    %12 = arith.addf %8, %11 : vector<4x8x96xf32>
    %13 = vector.extract_strided_slice %12 {offsets = [0, 0, 0], sizes = [4, 8, 8], strides = [1, 1, 1]} : vector<4x8x96xf32> to vector<4x8x8xf32>
    %14 = vector.extract_strided_slice %12 {offsets = [0, 0, 8], sizes = [4, 8, 8], strides = [1, 1, 1]} : vector<4x8x96xf32> to vector<4x8x8xf32>
    %15 = vector.extract_strided_slice %12 {offsets = [0, 0, 16], sizes = [4, 8, 8], strides = [1, 1, 1]} : vector<4x8x96xf32> to vector<4x8x8xf32>
    %16 = vector.extract_strided_slice %12 {offsets = [0, 0, 24], sizes = [4, 8, 8], strides = [1, 1, 1]} : vector<4x8x96xf32> to vector<4x8x8xf32>
    %17 = vector.shape_cast %13 : vector<4x8x8xf32> to vector<4x1x8x8xf32>
    %18 = vector.shape_cast %14 : vector<4x8x8xf32> to vector<4x1x8x8xf32>
    %19 = vector.shape_cast %15 : vector<4x8x8xf32> to vector<4x1x8x8xf32>
    %20 = vector.shape_cast %16 : vector<4x8x8xf32> to vector<4x1x8x8xf32>
    %21 = tpu.concatenate %17, %18, %19, %20 in 1 : vector<4x1x8x8xf32>, vector<4x1x8x8xf32>, vector<4x1x8x8xf32>, vector<4x1x8x8xf32> -> vector<4x4x8x8xf32>
    %22 = vector.shape_cast %21 : vector<4x4x8x8xf32> to vector<16x8x8xf32>
    %23 = vector.extract_strided_slice %12 {offsets = [0, 0, 32], sizes = [4, 8, 8], strides = [1, 1, 1]} : vector<4x8x96xf32> to vector<4x8x8xf32>
    %24 = vector.extract_strided_slice %12 {offsets = [0, 0, 40], sizes = [4, 8, 8], strides = [1, 1, 1]} : vector<4x8x96xf32> to vector<4x8x8xf32>
    %25 = vector.extract_strided_slice %12 {offsets = [0, 0, 48], sizes = [4, 8, 8], strides = [1, 1, 1]} : vector<4x8x96xf32> to vector<4x8x8xf32>
    %26 = vector.extract_strided_slice %12 {offsets = [0, 0, 56], sizes = [4, 8, 8], strides = [1, 1, 1]} : vector<4x8x96xf32> to vector<4x8x8xf32>
    %27 = vector.shape_cast %23 : vector<4x8x8xf32> to vector<4x1x8x8xf32>
    %28 = vector.shape_cast %24 : vector<4x8x8xf32> to vector<4x1x8x8xf32>
    %29 = vector.shape_cast %25 : vector<4x8x8xf32> to vector<4x1x8x8xf32>
    %30 = vector.shape_cast %26 : vector<4x8x8xf32> to vector<4x1x8x8xf32>
    %31 = tpu.concatenate %27, %28, %29, %30 in 1 : vector<4x1x8x8xf32>, vector<4x1x8x8xf32>, vector<4x1x8x8xf32>, vector<4x1x8x8xf32> -> vector<4x4x8x8xf32>
    %32 = vector.shape_cast %31 : vector<4x4x8x8xf32> to vector<16x8x8xf32>
    %33 = vector.extract_strided_slice %12 {offsets = [0, 0, 64], sizes = [4, 8, 8], strides = [1, 1, 1]} : vector<4x8x96xf32> to vector<4x8x8xf32>
    %34 = vector.extract_strided_slice %12 {offsets = [0, 0, 72], sizes = [4, 8, 8], strides = [1, 1, 1]} : vector<4x8x96xf32> to vector<4x8x8xf32>
    %35 = vector.extract_strided_slice %12 {offsets = [0, 0, 80], sizes = [4, 8, 8], strides = [1, 1, 1]} : vector<4x8x96xf32> to vector<4x8x8xf32>
    %36 = vector.extract_strided_slice %12 {offsets = [0, 0, 88], sizes = [4, 8, 8], strides = [1, 1, 1]} : vector<4x8x96xf32> to vector<4x8x8xf32>
    %37 = vector.shape_cast %33 : vector<4x8x8xf32> to vector<4x1x8x8xf32>
    %38 = vector.shape_cast %34 : vector<4x8x8xf32> to vector<4x1x8x8xf32>
    %39 = vector.shape_cast %35 : vector<4x8x8xf32> to vector<4x1x8x8xf32>
    %40 = vector.shape_cast %36 : vector<4x8x8xf32> to vector<4x1x8x8xf32>
    %41 = tpu.concatenate %37, %38, %39, %40 in 1 : vector<4x1x8x8xf32>, vector<4x1x8x8xf32>, vector<4x1x8x8xf32>, vector<4x1x8x8xf32> -> vector<4x4x8x8xf32>
    %42 = vector.shape_cast %41 : vector<4x4x8x8xf32> to vector<16x8x8xf32>
    "tpu.trace_start"() <{level = 10 : i32, message = "zle,zse->zls"}> : () -> ()
    %cst_11 = arith.constant dense<0.000000e+00> : vector<16x8x8xf32>
    %43 = tpu.matmul %22, %32, %cst_11 {dimension_numbers = #tpu.dot_dimension_numbers<[2], [2], [1], [1], [0, 0, 0, 1, 1, 1], [0], [0]>} : vector<16x8x8xf32>, vector<16x8x8xf32>, vector<16x8x8xf32> -> vector<16x8x8xf32>
    "tpu.trace_stop"() : () -> ()
    %cst_12 = arith.constant dense<0xFF800000> : vector<16x8xf32>
    %44 = vector.multi_reduction <maximumf>, %43, %cst_12 [2] : vector<16x8x8xf32> to vector<16x8xf32>
    %45 = vector.shape_cast %44 : vector<16x8xf32> to vector<16x8x1xf32>
    %46 = vector.broadcast %45 : vector<16x8x1xf32> to vector<16x8x8xf32>
    %47 = arith.subf %43, %46 : vector<16x8x8xf32>
    %48 = math.exp %47 : vector<16x8x8xf32>
    %cst_13 = arith.constant dense<0.000000e+00> : vector<16x8xf32>
    %49 = vector.multi_reduction <add>, %48, %cst_13 [2] : vector<16x8x8xf32> to vector<16x8xf32>
    %50 = vector.shape_cast %49 : vector<16x8xf32> to vector<16x8x1xf32>
    %51 = vector.broadcast %50 : vector<16x8x1xf32> to vector<16x8x8xf32>
    %52 = arith.divf %48, %51 : vector<16x8x8xf32>
    %53 = vector.shape_cast %52 : vector<16x8x8xf32> to vector<4x1x4x8x8xf32>
    %54 = vector.extract_strided_slice %53 {offsets = [0, 0, 0, 0, 0], sizes = [1, 1, 1, 8, 8], strides = [1, 1, 1, 1, 1]} : vector<4x1x4x8x8xf32> to vector<1x1x1x8x8xf32>
    %55 = vector.shape_cast %54 : vector<1x1x1x8x8xf32> to vector<1x8x8xf32>
    %56 = arith.truncf %55 : vector<1x8x8xf32> to vector<1x8x8xbf16>
    %c0_14 = arith.constant 0 : index
    %c0_15 = arith.constant 0 : index
    %c0_16 = arith.constant 0 : index
    %c0_17 = arith.constant 0 : index
    %57 = vector.load %arg18[%c0_14, %c0_15, %c0_16, %c0_17] : memref<1x1x8x128xbf16, #tpu.memory_space<vmem>>, vector<1x1x8x8xbf16>
    %58 = vector.shape_cast %57 : vector<1x1x8x8xbf16> to vector<1x8x8xbf16>
    %59 = vector.shape_cast %56 : vector<1x8x8xbf16> to vector<1x1x8x8xbf16>
    tpu.vector_store %arg18[%c0_14, %c0_15, %c0_16, %c0_17], %59 {strides = array<i32>} : memref<1x1x8x128xbf16, #tpu.memory_space<vmem>>, vector<1x1x8x8xbf16>,
    %60 = vector.extract_strided_slice %53 {offsets = [0, 0, 1, 0, 0], sizes = [1, 1, 1, 8, 8], strides = [1, 1, 1, 1, 1]} : vector<4x1x4x8x8xf32> to vector<1x1x1x8x8xf32>
    %61 = vector.shape_cast %60 : vector<1x1x1x8x8xf32> to vector<1x8x8xf32>
    %62 = arith.truncf %61 : vector<1x8x8xf32> to vector<1x8x8xbf16>
    %c0_18 = arith.constant 0 : index
    %c0_19 = arith.constant 0 : index
    %c0_20 = arith.constant 0 : index
    %c8 = arith.constant 8 : index
    %63 = vector.load %arg18[%c0_18, %c0_19, %c0_20, %c8] : memref<1x1x8x128xbf16, #tpu.memory_space<vmem>>, vector<1x1x8x8xbf16>
    %64 = vector.shape_cast %63 : vector<1x1x8x8xbf16> to vector<1x8x8xbf16>
    %65 = vector.shape_cast %62 : vector<1x8x8xbf16> to vector<1x1x8x8xbf16>
    tpu.vector_store %arg18[%c0_18, %c0_19, %c0_20, %c8], %65 {strides = array<i32>} : memref<1x1x8x128xbf16, #tpu.memory_space<vmem>>, vector<1x1x8x8xbf16>,
    %66 = vector.extract_strided_slice %53 {offsets = [0, 0, 2, 0, 0], sizes = [1, 1, 1, 8, 8], strides = [1, 1, 1, 1, 1]} : vector<4x1x4x8x8xf32> to vector<1x1x1x8x8xf32>
    %67 = vector.shape_cast %66 : vector<1x1x1x8x8xf32> to vector<1x8x8xf32>
    %68 = arith.truncf %67 : vector<1x8x8xf32> to vector<1x8x8xbf16>
    %c0_21 = arith.constant 0 : index
    %c0_22 = arith.constant 0 : index
    %c0_23 = arith.constant 0 : index
    %c16 = arith.constant 16 : index
    %69 = vector.load %arg18[%c0_21, %c0_22, %c0_23, %c16] : memref<1x1x8x128xbf16, #tpu.memory_space<vmem>>, vector<1x1x8x8xbf16>
    %70 = vector.shape_cast %69 : vector<1x1x8x8xbf16> to vector<1x8x8xbf16>
    %71 = vector.shape_cast %68 : vector<1x8x8xbf16> to vector<1x1x8x8xbf16>
    tpu.vector_store %arg18[%c0_21, %c0_22, %c0_23, %c16], %71 {strides = array<i32>} : memref<1x1x8x128xbf16, #tpu.memory_space<vmem>>, vector<1x1x8x8xbf16>,
    %72 = vector.extract_strided_slice %53 {offsets = [0, 0, 3, 0, 0], sizes = [1, 1, 1, 8, 8], strides = [1, 1, 1, 1, 1]} : vector<4x1x4x8x8xf32> to vector<1x1x1x8x8xf32>
    %73 = vector.shape_cast %72 : vector<1x1x1x8x8xf32> to vector<1x8x8xf32>
    %74 = arith.truncf %73 : vector<1x8x8xf32> to vector<1x8x8xbf16>
    %c0_24 = arith.constant 0 : index
    %c0_25 = arith.constant 0 : index
    %c0_26 = arith.constant 0 : index
    %c24 = arith.constant 24 : index
    %75 = vector.load %arg18[%c0_24, %c0_25, %c0_26, %c24] : memref<1x1x8x128xbf16, #tpu.memory_space<vmem>>, vector<1x1x8x8xbf16>
    %76 = vector.shape_cast %75 : vector<1x1x8x8xbf16> to vector<1x8x8xbf16>
    %77 = vector.shape_cast %74 : vector<1x8x8xbf16> to vector<1x1x8x8xbf16>
    tpu.vector_store %arg18[%c0_24, %c0_25, %c0_26, %c24], %77 {strides = array<i32>} : memref<1x1x8x128xbf16, #tpu.memory_space<vmem>>, vector<1x1x8x8xbf16>,
    %78 = vector.extract_strided_slice %53 {offsets = [1, 0, 0, 0, 0], sizes = [1, 1, 1, 8, 8], strides = [1, 1, 1, 1, 1]} : vector<4x1x4x8x8xf32> to vector<1x1x1x8x8xf32>
    %79 = vector.shape_cast %78 : vector<1x1x1x8x8xf32> to vector<1x8x8xf32>
    %80 = arith.truncf %79 : vector<1x8x8xf32> to vector<1x8x8xbf16>
    %c0_27 = arith.constant 0 : index
    %c0_28 = arith.constant 0 : index
    %c0_29 = arith.constant 0 : index
    %c32 = arith.constant 32 : index
    %81 = vector.load %arg18[%c0_27, %c0_28, %c0_29, %c32] : memref<1x1x8x128xbf16, #tpu.memory_space<vmem>>, vector<1x1x8x8xbf16>
    %82 = vector.shape_cast %81 : vector<1x1x8x8xbf16> to vector<1x8x8xbf16>
    %83 = vector.shape_cast %80 : vector<1x8x8xbf16> to vector<1x1x8x8xbf16>
    tpu.vector_store %arg18[%c0_27, %c0_28, %c0_29, %c32], %83 {strides = array<i32>} : memref<1x1x8x128xbf16, #tpu.memory_space<vmem>>, vector<1x1x8x8xbf16>,
    %84 = vector.extract_strided_slice %53 {offsets = [1, 0, 1, 0, 0], sizes = [1, 1, 1, 8, 8], strides = [1, 1, 1, 1, 1]} : vector<4x1x4x8x8xf32> to vector<1x1x1x8x8xf32>
    %85 = vector.shape_cast %84 : vector<1x1x1x8x8xf32> to vector<1x8x8xf32>
    %86 = arith.truncf %85 : vector<1x8x8xf32> to vector<1x8x8xbf16>
    %c0_30 = arith.constant 0 : index
    %c0_31 = arith.constant 0 : index
    %c0_32 = arith.constant 0 : index
    %c40 = arith.constant 40 : index
    %87 = vector.load %arg18[%c0_30, %c0_31, %c0_32, %c40] : memref<1x1x8x128xbf16, #tpu.memory_space<vmem>>, vector<1x1x8x8xbf16>
    %88 = vector.shape_cast %87 : vector<1x1x8x8xbf16> to vector<1x8x8xbf16>
    %89 = vector.shape_cast %86 : vector<1x8x8xbf16> to vector<1x1x8x8xbf16>
    tpu.vector_store %arg18[%c0_30, %c0_31, %c0_32, %c40], %89 {strides = array<i32>} : memref<1x1x8x128xbf16, #tpu.memory_space<vmem>>, vector<1x1x8x8xbf16>,
    %90 = vector.extract_strided_slice %53 {offsets = [1, 0, 2, 0, 0], sizes = [1, 1, 1, 8, 8], strides = [1, 1, 1, 1, 1]} : vector<4x1x4x8x8xf32> to vector<1x1x1x8x8xf32>
    %91 = vector.shape_cast %90 : vector<1x1x1x8x8xf32> to vector<1x8x8xf32>
    %92 = arith.truncf %91 : vector<1x8x8xf32> to vector<1x8x8xbf16>
    %c0_33 = arith.constant 0 : index
    %c0_34 = arith.constant 0 : index
    %c0_35 = arith.constant 0 : index
    %c48 = arith.constant 48 : index
    %93 = vector.load %arg18[%c0_33, %c0_34, %c0_35, %c48] : memref<1x1x8x128xbf16, #tpu.memory_space<vmem>>, vector<1x1x8x8xbf16>
    %94 = vector.shape_cast %93 : vector<1x1x8x8xbf16> to vector<1x8x8xbf16>
    %95 = vector.shape_cast %92 : vector<1x8x8xbf16> to vector<1x1x8x8xbf16>
    tpu.vector_store %arg18[%c0_33, %c0_34, %c0_35, %c48], %95 {strides = array<i32>} : memref<1x1x8x128xbf16, #tpu.memory_space<vmem>>, vector<1x1x8x8xbf16>,
    %96 = vector.extract_strided_slice %53 {offsets = [1, 0, 3, 0, 0], sizes = [1, 1, 1, 8, 8], strides = [1, 1, 1, 1, 1]} : vector<4x1x4x8x8xf32> to vector<1x1x1x8x8xf32>
    %97 = vector.shape_cast %96 : vector<1x1x1x8x8xf32> to vector<1x8x8xf32>
    %98 = arith.truncf %97 : vector<1x8x8xf32> to vector<1x8x8xbf16>
    %c0_36 = arith.constant 0 : index
    %c0_37 = arith.constant 0 : index
    %c0_38 = arith.constant 0 : index
    %c56 = arith.constant 56 : index
    %99 = vector.load %arg18[%c0_36, %c0_37, %c0_38, %c56] : memref<1x1x8x128xbf16, #tpu.memory_space<vmem>>, vector<1x1x8x8xbf16>
    %100 = vector.shape_cast %99 : vector<1x1x8x8xbf16> to vector<1x8x8xbf16>
    %101 = vector.shape_cast %98 : vector<1x8x8xbf16> to vector<1x1x8x8xbf16>
    tpu.vector_store %arg18[%c0_36, %c0_37, %c0_38, %c56], %101 {strides = array<i32>} : memref<1x1x8x128xbf16, #tpu.memory_space<vmem>>, vector<1x1x8x8xbf16>,
    %102 = vector.extract_strided_slice %53 {offsets = [2, 0, 0, 0, 0], sizes = [1, 1, 1, 8, 8], strides = [1, 1, 1, 1, 1]} : vector<4x1x4x8x8xf32> to vector<1x1x1x8x8xf32>
    %103 = vector.shape_cast %102 : vector<1x1x1x8x8xf32> to vector<1x8x8xf32>
    %104 = arith.truncf %103 : vector<1x8x8xf32> to vector<1x8x8xbf16>
    %c0_39 = arith.constant 0 : index
    %c0_40 = arith.constant 0 : index
    %c0_41 = arith.constant 0 : index
    %c64 = arith.constant 64 : index
    %105 = vector.load %arg18[%c0_39, %c0_40, %c0_41, %c64] : memref<1x1x8x128xbf16, #tpu.memory_space<vmem>>, vector<1x1x8x8xbf16>
    %106 = vector.shape_cast %105 : vector<1x1x8x8xbf16> to vector<1x8x8xbf16>
    %107 = vector.shape_cast %104 : vector<1x8x8xbf16> to vector<1x1x8x8xbf16>
    tpu.vector_store %arg18[%c0_39, %c0_40, %c0_41, %c64], %107 {strides = array<i32>} : memref<1x1x8x128xbf16, #tpu.memory_space<vmem>>, vector<1x1x8x8xbf16>,
    %108 = vector.extract_strided_slice %53 {offsets = [2, 0, 1, 0, 0], sizes = [1, 1, 1, 8, 8], strides = [1, 1, 1, 1, 1]} : vector<4x1x4x8x8xf32> to vector<1x1x1x8x8xf32>
    %109 = vector.shape_cast %108 : vector<1x1x1x8x8xf32> to vector<1x8x8xf32>
    %110 = arith.truncf %109 : vector<1x8x8xf32> to vector<1x8x8xbf16>
    %c0_42 = arith.constant 0 : index
    %c0_43 = arith.constant 0 : index
    %c0_44 = arith.constant 0 : index
    %c72 = arith.constant 72 : index
    %111 = vector.load %arg18[%c0_42, %c0_43, %c0_44, %c72] : memref<1x1x8x128xbf16, #tpu.memory_space<vmem>>, vector<1x1x8x8xbf16>
    %112 = vector.shape_cast %111 : vector<1x1x8x8xbf16> to vector<1x8x8xbf16>
    %113 = vector.shape_cast %110 : vector<1x8x8xbf16> to vector<1x1x8x8xbf16>
    tpu.vector_store %arg18[%c0_42, %c0_43, %c0_44, %c72], %113 {strides = array<i32>} : memref<1x1x8x128xbf16, #tpu.memory_space<vmem>>, vector<1x1x8x8xbf16>,
    %114 = vector.extract_strided_slice %53 {offsets = [2, 0, 2, 0, 0], sizes = [1, 1, 1, 8, 8], strides = [1, 1, 1, 1, 1]} : vector<4x1x4x8x8xf32> to vector<1x1x1x8x8xf32>
    %115 = vector.shape_cast %114 : vector<1x1x1x8x8xf32> to vector<1x8x8xf32>
    %116 = arith.truncf %115 : vector<1x8x8xf32> to vector<1x8x8xbf16>
    %c0_45 = arith.constant 0 : index
    %c0_46 = arith.constant 0 : index
    %c0_47 = arith.constant 0 : index
    %c80 = arith.constant 80 : index
    %117 = vector.load %arg18[%c0_45, %c0_46, %c0_47, %c80] : memref<1x1x8x128xbf16, #tpu.memory_space<vmem>>, vector<1x1x8x8xbf16>
    %118 = vector.shape_cast %117 : vector<1x1x8x8xbf16> to vector<1x8x8xbf16>
    %119 = vector.shape_cast %116 : vector<1x8x8xbf16> to vector<1x1x8x8xbf16>
    tpu.vector_store %arg18[%c0_45, %c0_46, %c0_47, %c80], %119 {strides = array<i32>} : memref<1x1x8x128xbf16, #tpu.memory_space<vmem>>, vector<1x1x8x8xbf16>,
    %120 = vector.extract_strided_slice %53 {offsets = [2, 0, 3, 0, 0], sizes = [1, 1, 1, 8, 8], strides = [1, 1, 1, 1, 1]} : vector<4x1x4x8x8xf32> to vector<1x1x1x8x8xf32>
    %121 = vector.shape_cast %120 : vector<1x1x1x8x8xf32> to vector<1x8x8xf32>
    %122 = arith.truncf %121 : vector<1x8x8xf32> to vector<1x8x8xbf16>
    %c0_48 = arith.constant 0 : index
    %c0_49 = arith.constant 0 : index
    %c0_50 = arith.constant 0 : index
    %c88 = arith.constant 88 : index
    %123 = vector.load %arg18[%c0_48, %c0_49, %c0_50, %c88] : memref<1x1x8x128xbf16, #tpu.memory_space<vmem>>, vector<1x1x8x8xbf16>
    %124 = vector.shape_cast %123 : vector<1x1x8x8xbf16> to vector<1x8x8xbf16>
    %125 = vector.shape_cast %122 : vector<1x8x8xbf16> to vector<1x1x8x8xbf16>
    tpu.vector_store %arg18[%c0_48, %c0_49, %c0_50, %c88], %125 {strides = array<i32>} : memref<1x1x8x128xbf16, #tpu.memory_space<vmem>>, vector<1x1x8x8xbf16>,
    %126 = vector.extract_strided_slice %53 {offsets = [3, 0, 0, 0, 0], sizes = [1, 1, 1, 8, 8], strides = [1, 1, 1, 1, 1]} : vector<4x1x4x8x8xf32> to vector<1x1x1x8x8xf32>
    %127 = vector.shape_cast %126 : vector<1x1x1x8x8xf32> to vector<1x8x8xf32>
    %128 = arith.truncf %127 : vector<1x8x8xf32> to vector<1x8x8xbf16>
    %c0_51 = arith.constant 0 : index
    %c0_52 = arith.constant 0 : index
    %c0_53 = arith.constant 0 : index
    %c96 = arith.constant 96 : index
    %129 = vector.load %arg18[%c0_51, %c0_52, %c0_53, %c96] : memref<1x1x8x128xbf16, #tpu.memory_space<vmem>>, vector<1x1x8x8xbf16>
    %130 = vector.shape_cast %129 : vector<1x1x8x8xbf16> to vector<1x8x8xbf16>
    %131 = vector.shape_cast %128 : vector<1x8x8xbf16> to vector<1x1x8x8xbf16>
    tpu.vector_store %arg18[%c0_51, %c0_52, %c0_53, %c96], %131 {strides = array<i32>} : memref<1x1x8x128xbf16, #tpu.memory_space<vmem>>, vector<1x1x8x8xbf16>,
    %132 = vector.extract_strided_slice %53 {offsets = [3, 0, 1, 0, 0], sizes = [1, 1, 1, 8, 8], strides = [1, 1, 1, 1, 1]} : vector<4x1x4x8x8xf32> to vector<1x1x1x8x8xf32>
    %133 = vector.shape_cast %132 : vector<1x1x1x8x8xf32> to vector<1x8x8xf32>
    %134 = arith.truncf %133 : vector<1x8x8xf32> to vector<1x8x8xbf16>
    %c0_54 = arith.constant 0 : index
    %c0_55 = arith.constant 0 : index
    %c0_56 = arith.constant 0 : index
    %c104 = arith.constant 104 : index
    %135 = vector.load %arg18[%c0_54, %c0_55, %c0_56, %c104] : memref<1x1x8x128xbf16, #tpu.memory_space<vmem>>, vector<1x1x8x8xbf16>
    %136 = vector.shape_cast %135 : vector<1x1x8x8xbf16> to vector<1x8x8xbf16>
    %137 = vector.shape_cast %134 : vector<1x8x8xbf16> to vector<1x1x8x8xbf16>
    tpu.vector_store %arg18[%c0_54, %c0_55, %c0_56, %c104], %137 {strides = array<i32>} : memref<1x1x8x128xbf16, #tpu.memory_space<vmem>>, vector<1x1x8x8xbf16>,
    %138 = vector.extract_strided_slice %53 {offsets = [3, 0, 2, 0, 0], sizes = [1, 1, 1, 8, 8], strides = [1, 1, 1, 1, 1]} : vector<4x1x4x8x8xf32> to vector<1x1x1x8x8xf32>
    %139 = vector.shape_cast %138 : vector<1x1x1x8x8xf32> to vector<1x8x8xf32>
    %140 = arith.truncf %139 : vector<1x8x8xf32> to vector<1x8x8xbf16>
    %c0_57 = arith.constant 0 : index
    %c0_58 = arith.constant 0 : index
    %c0_59 = arith.constant 0 : index
    %c112 = arith.constant 112 : index
    %141 = vector.load %arg18[%c0_57, %c0_58, %c0_59, %c112] : memref<1x1x8x128xbf16, #tpu.memory_space<vmem>>, vector<1x1x8x8xbf16>
    %142 = vector.shape_cast %141 : vector<1x1x8x8xbf16> to vector<1x8x8xbf16>
    %143 = vector.shape_cast %140 : vector<1x8x8xbf16> to vector<1x1x8x8xbf16>
    tpu.vector_store %arg18[%c0_57, %c0_58, %c0_59, %c112], %143 {strides = array<i32>} : memref<1x1x8x128xbf16, #tpu.memory_space<vmem>>, vector<1x1x8x8xbf16>,
    %144 = vector.extract_strided_slice %53 {offsets = [3, 0, 3, 0, 0], sizes = [1, 1, 1, 8, 8], strides = [1, 1, 1, 1, 1]} : vector<4x1x4x8x8xf32> to vector<1x1x1x8x8xf32>
    %145 = vector.shape_cast %144 : vector<1x1x1x8x8xf32> to vector<1x8x8xf32>
    %146 = arith.truncf %145 : vector<1x8x8xf32> to vector<1x8x8xbf16>
    %c0_60 = arith.constant 0 : index
    %c0_61 = arith.constant 0 : index
    %c0_62 = arith.constant 0 : index
    %c120 = arith.constant 120 : index
    %147 = vector.load %arg18[%c0_60, %c0_61, %c0_62, %c120] : memref<1x1x8x128xbf16, #tpu.memory_space<vmem>>, vector<1x1x8x8xbf16>
    %148 = vector.shape_cast %147 : vector<1x1x8x8xbf16> to vector<1x8x8xbf16>
    %149 = vector.shape_cast %146 : vector<1x8x8xbf16> to vector<1x1x8x8xbf16>
    tpu.vector_store %arg18[%c0_60, %c0_61, %c0_62, %c120], %149 {strides = array<i32>} : memref<1x1x8x128xbf16, #tpu.memory_space<vmem>>, vector<1x1x8x8xbf16>,
    "tpu.trace_start"() <{level = 10 : i32, message = "zls,zsd->zld"}> : () -> ()
    %cst_63 = arith.constant dense<0.000000e+00> : vector<16x8x8xf32>
    %150 = tpu.matmul %52, %42, %cst_63 {dimension_numbers = #tpu.dot_dimension_numbers<[2], [1], [1], [2], [0, 0, 0, 1, 1, 2], [0], [0]>} : vector<16x8x8xf32>, vector<16x8x8xf32>, vector<16x8x8xf32> -> vector<16x8x8xf32>
    "tpu.trace_stop"() : () -> ()
    %151 = vector.shape_cast %150 : vector<16x8x8xf32> to vector<4x4x8x8xf32>
    %152 = vector.extract_strided_slice %151 {offsets = [0, 0, 0, 0], sizes = [4, 1, 8, 8], strides = [1, 1, 1, 1]} : vector<4x4x8x8xf32> to vector<4x1x8x8xf32>
    %153 = vector.shape_cast %152 : vector<4x1x8x8xf32> to vector<4x8x8xf32>
    %154 = vector.shape_cast %153 : vector<4x8x8xf32> to vector<32x8xf32>
    %c0_64 = arith.constant 0 : index
    %c0_65 = arith.constant 0 : index
    %155 = vector.load %arg20[%c0_64, %c0_65] : memref<32x32xf32, #tpu.memory_space<vmem>>, vector<32x8xf32>
    tpu.vector_store %arg20[%c0_64, %c0_65], %154 {strides = array<i32>} : memref<32x32xf32, #tpu.memory_space<vmem>>, vector<32x8xf32>,
    %156 = vector.extract_strided_slice %151 {offsets = [0, 1, 0, 0], sizes = [4, 1, 8, 8], strides = [1, 1, 1, 1]} : vector<4x4x8x8xf32> to vector<4x1x8x8xf32>
    %157 = vector.shape_cast %156 : vector<4x1x8x8xf32> to vector<4x8x8xf32>
    %158 = vector.shape_cast %157 : vector<4x8x8xf32> to vector<32x8xf32>
    %c0_66 = arith.constant 0 : index
    %c8_67 = arith.constant 8 : index
    %159 = vector.load %arg20[%c0_66, %c8_67] : memref<32x32xf32, #tpu.memory_space<vmem>>, vector<32x8xf32>
    tpu.vector_store %arg20[%c0_66, %c8_67], %158 {strides = array<i32>} : memref<32x32xf32, #tpu.memory_space<vmem>>, vector<32x8xf32>,
    %160 = vector.extract_strided_slice %151 {offsets = [0, 2, 0, 0], sizes = [4, 1, 8, 8], strides = [1, 1, 1, 1]} : vector<4x4x8x8xf32> to vector<4x1x8x8xf32>
    %161 = vector.shape_cast %160 : vector<4x1x8x8xf32> to vector<4x8x8xf32>
    %162 = vector.shape_cast %161 : vector<4x8x8xf32> to vector<32x8xf32>
    %c0_68 = arith.constant 0 : index
    %c16_69 = arith.constant 16 : index
    %163 = vector.load %arg20[%c0_68, %c16_69] : memref<32x32xf32, #tpu.memory_space<vmem>>, vector<32x8xf32>
    tpu.vector_store %arg20[%c0_68, %c16_69], %162 {strides = array<i32>} : memref<32x32xf32, #tpu.memory_space<vmem>>, vector<32x8xf32>,
    %164 = vector.extract_strided_slice %151 {offsets = [0, 3, 0, 0], sizes = [4, 1, 8, 8], strides = [1, 1, 1, 1]} : vector<4x4x8x8xf32> to vector<4x1x8x8xf32>
    %165 = vector.shape_cast %164 : vector<4x1x8x8xf32> to vector<4x8x8xf32>
    %166 = vector.shape_cast %165 : vector<4x8x8xf32> to vector<32x8xf32>
    %c0_70 = arith.constant 0 : index
    %c24_71 = arith.constant 24 : index
    %167 = vector.load %arg20[%c0_70, %c24_71] : memref<32x32xf32, #tpu.memory_space<vmem>>, vector<32x8xf32>
    tpu.vector_store %arg20[%c0_70, %c24_71], %166 {strides = array<i32>} : memref<32x32xf32, #tpu.memory_space<vmem>>, vector<32x8xf32>,
    %c0_72 = arith.constant 0 : index
    %c0_73 = arith.constant 0 : index
    %168 = vector.load %arg20[%c0_72, %c0_73] : memref<32x32xf32, #tpu.memory_space<vmem>>, vector<32x32xf32>
    %c0_74 = arith.constant 0 : index
    %c0_75 = arith.constant 0 : index
    %c0_76 = arith.constant 0 : index
    %169 = vector.load %arg7[%c0_74, %c0_75, %c0_76] : memref<1x32x32xbf16, #tpu.memory_space<vmem>>, vector<1x32x32xbf16>
    %170 = vector.shape_cast %169 : vector<1x32x32xbf16> to vector<32x32xbf16>
    %171 = arith.truncf %168 : vector<32x32xf32> to vector<32x32xbf16>
    %cst_77 = arith.constant dense<0.000000e+00> : vector<32x32xf32>
    %172 = tpu.matmul %171, %170, %cst_77 {dimension_numbers = #tpu.dot_dimension_numbers<[1], [0], [0], [1], [0, 0, 1, 1], [], []>} : vector<32x32xbf16>, vector<32x32xbf16>, vector<32x32xf32> -> vector<32x32xf32>
    %c0_78 = arith.constant 0 : index
    %c0_79 = arith.constant 0 : index
    %c0_80 = arith.constant 0 : index
    %173 = vector.load %arg8[%c0_78, %c0_79, %c0_80] : memref<1x1x32xf32, #tpu.memory_space<vmem>>, vector<1x1x32xf32>
    %174 = vector.shape_cast %173 : vector<1x1x32xf32> to vector<1x32xf32>
    %175 = vector.broadcast %174 : vector<1x32xf32> to vector<32x32xf32>
    %176 = arith.addf %172, %175 : vector<32x32xf32>
    %177 = arith.addf %4, %176 : vector<32x32xf32>
    %c0_81 = arith.constant 0 : index
    %c0_82 = arith.constant 0 : index
    %c0_83 = arith.constant 0 : index
    %178 = vector.load %arg9[%c0_81, %c0_82, %c0_83] : memref<1x1x32xf32, #tpu.memory_space<vmem>>, vector<1x1x32xf32>
    %179 = vector.shape_cast %178 : vector<1x1x32xf32> to vector<1x32xf32>
    %c0_84 = arith.constant 0 : index
    %c0_85 = arith.constant 0 : index
    %c0_86 = arith.constant 0 : index
    %180 = vector.load %arg10[%c0_84, %c0_85, %c0_86] : memref<1x1x32xf32, #tpu.memory_space<vmem>>, vector<1x1x32xf32>
    %181 = vector.shape_cast %180 : vector<1x1x32xf32> to vector<1x32xf32>
    %cst_87 = arith.constant dense<0.000000e+00> : vector<32xf32>
    %182 = vector.multi_reduction <add>, %177, %cst_87 [1] : vector<32x32xf32> to vector<32xf32>
    %183 = vector.shape_cast %182 : vector<32xf32> to vector<32x1xf32>
    %cst_88 = arith.constant 3.200000e+01 : f32
    %184 = vector.broadcast %cst_88 : f32 to vector<32x1xf32>
    %185 = arith.divf %183, %184 : vector<32x1xf32>
    %186 = vector.broadcast %185 : vector<32x1xf32> to vector<32x32xf32>
    %187 = arith.subf %177, %186 : vector<32x32xf32>
    %188 = arith.mulf %187, %187 : vector<32x32xf32>
    %cst_89 = arith.constant dense<0.000000e+00> : vector<32xf32>
    %189 = vector.multi_reduction <add>, %188, %cst_89 [1] : vector<32x32xf32> to vector<32xf32>
    %190 = vector.shape_cast %189 : vector<32xf32> to vector<32x1xf32>
    %cst_90 = arith.constant 3.200000e+01 : f32
    %191 = vector.broadcast %cst_90 : f32 to vector<32x1xf32>
    %192 = arith.divf %190, %191 : vector<32x1xf32>
    %193 = vector.broadcast %185 : vector<32x1xf32> to vector<32x32xf32>
    %194 = arith.subf %177, %193 : vector<32x32xf32>
    %cst_91 = arith.constant 9.99999974E-6 : f32
    %195 = vector.broadcast %cst_91 : f32 to vector<32x1xf32>
    %196 = arith.addf %192, %195 : vector<32x1xf32>
    %197 = math.rsqrt %196 : vector<32x1xf32>
    %198 = vector.broadcast %197 : vector<32x1xf32> to vector<32x32xf32>
    %199 = arith.mulf %194, %198 : vector<32x32xf32>
    %200 = vector.broadcast %179 : vector<1x32xf32> to vector<32x32xf32>
    %201 = arith.mulf %199, %200 : vector<32x32xf32>
    %202 = vector.broadcast %181 : vector<1x32xf32> to vector<32x32xf32>
    %203 = arith.addf %201, %202 : vector<32x32xf32>
    %c0_92 = arith.constant 0 : index
    %c0_93 = arith.constant 0 : index
    %c0_94 = arith.constant 0 : index
    %204 = vector.load %arg13[%c0_92, %c0_93, %c0_94] : memref<1x32x128xbf16, #tpu.memory_space<vmem>>, vector<1x32x128xbf16>
    %205 = vector.shape_cast %204 : vector<1x32x128xbf16> to vector<32x128xbf16>
    %206 = arith.truncf %203 : vector<32x32xf32> to vector<32x32xbf16>
    %cst_95 = arith.constant dense<0.000000e+00> : vector<32x128xf32>
    %207 = tpu.matmul %206, %205, %cst_95 {dimension_numbers = #tpu.dot_dimension_numbers<[1], [0], [0], [1], [0, 0, 1, 1], [], []>} : vector<32x32xbf16>, vector<32x128xbf16>, vector<32x128xf32> -> vector<32x128xf32>
    %cst_96 = arith.constant 0.000000e+00 : f32
    %208 = vector.broadcast %cst_96 : f32 to vector<32x128xf32>
    %209 = arith.maximumf %207, %208 : vector<32x128xf32>
    %c0_97 = arith.constant 0 : index
    %c0_98 = arith.constant 0 : index
    %c0_99 = arith.constant 0 : index
    %210 = vector.load %arg14[%c0_97, %c0_98, %c0_99] : memref<1x128x32xbf16, #tpu.memory_space<vmem>>, vector<1x128x32xbf16>
    %211 = vector.shape_cast %210 : vector<1x128x32xbf16> to vector<128x32xbf16>
    %212 = arith.truncf %209 : vector<32x128xf32> to vector<32x128xbf16>
    %cst_100 = arith.constant dense<0.000000e+00> : vector<32x32xf32>
    %213 = tpu.matmul %212, %211, %cst_100 {dimension_numbers = #tpu.dot_dimension_numbers<[1], [0], [0], [1], [0, 0, 1, 1], [], []>} : vector<32x128xbf16>, vector<128x32xbf16>, vector<32x32xf32> -> vector<32x32xf32>
    %214 = arith.addf %203, %213 : vector<32x32xf32>
    %c0_101 = arith.constant 0 : index
    %c0_102 = arith.constant 0 : index
    %c0_103 = arith.constant 0 : index
    %215 = vector.load %arg11[%c0_101, %c0_102, %c0_103] : memref<1x1x32xf32, #tpu.memory_space<vmem>>, vector<1x1x32xf32>
    %216 = vector.shape_cast %215 : vector<1x1x32xf32> to vector<1x32xf32>
    %c0_104 = arith.constant 0 : index
    %c0_105 = arith.constant 0 : index
    %c0_106 = arith.constant 0 : index
    %217 = vector.load %arg12[%c0_104, %c0_105, %c0_106] : memref<1x1x32xf32, #tpu.memory_space<vmem>>, vector<1x1x32xf32>
    %218 = vector.shape_cast %217 : vector<1x1x32xf32> to vector<1x32xf32>
    %cst_107 = arith.constant dense<0.000000e+00> : vector<32xf32>
    %219 = vector.multi_reduction <add>, %214, %cst_107 [1] : vector<32x32xf32> to vector<32xf32>
    %220 = vector.shape_cast %219 : vector<32xf32> to vector<32x1xf32>
    %cst_108 = arith.constant 3.200000e+01 : f32
    %221 = vector.broadcast %cst_108 : f32 to vector<32x1xf32>
    %222 = arith.divf %220, %221 : vector<32x1xf32>
    %223 = vector.broadcast %222 : vector<32x1xf32> to vector<32x32xf32>
    %224 = arith.subf %214, %223 : vector<32x32xf32>
    %225 = arith.mulf %224, %224 : vector<32x32xf32>
    %cst_109 = arith.constant dense<0.000000e+00> : vector<32xf32>
    %226 = vector.multi_reduction <add>, %225, %cst_109 [1] : vector<32x32xf32> to vector<32xf32>
    %227 = vector.shape_cast %226 : vector<32xf32> to vector<32x1xf32>
    %cst_110 = arith.constant 3.200000e+01 : f32
    %228 = vector.broadcast %cst_110 : f32 to vector<32x1xf32>
    %229 = arith.divf %227, %228 : vector<32x1xf32>
    %230 = vector.broadcast %222 : vector<32x1xf32> to vector<32x32xf32>
    %231 = arith.subf %214, %230 : vector<32x32xf32>
    %cst_111 = arith.constant 9.99999974E-6 : f32
    %232 = vector.broadcast %cst_111 : f32 to vector<32x1xf32>
    %233 = arith.addf %229, %232 : vector<32x1xf32>
    %234 = math.rsqrt %233 : vector<32x1xf32>
    %235 = vector.broadcast %234 : vector<32x1xf32> to vector<32x32xf32>
    %236 = arith.mulf %231, %235 : vector<32x32xf32>
    %237 = vector.broadcast %216 : vector<1x32xf32> to vector<32x32xf32>
    %238 = arith.mulf %236, %237 : vector<32x32xf32>
    %239 = vector.broadcast %218 : vector<1x32xf32> to vector<32x32xf32>
    %240 = arith.addf %238, %239 : vector<32x32xf32>
    %241 = vector.shape_cast %240 : vector<32x32xf32> to vector<4x8x32xf32>
    %c0_112 = arith.constant 0 : index
    %c0_113 = arith.constant 0 : index
    %c0_114 = arith.constant 0 : index
    %242 = vector.load %arg19[%c0_112, %c0_113, %c0_114] : memref<4x8x32xf32, #tpu.memory_space<vmem>>, vector<4x8x32xf32>
    tpu.vector_store %arg19[%c0_112, %c0_113, %c0_114], %241 {strides = array<i32>} : memref<4x8x32xf32, #tpu.memory_space<vmem>>, vector<4x8x32xf32>,
    %c1_i32 = arith.constant 1 : i32
    %243 = arith.cmpi eq, %arg1, %c1_i32 : i32
    %244 = arith.extui %243 : i1 to i32
    %c0_i32_115 = arith.constant 0 : i32
    %245 = arith.cmpi ne, %244, %c0_i32_115 : i32
    scf.if %245 {
      %c0_116 = arith.constant 0 : index
      %c0_117 = arith.constant 0 : index
      %246 = vector.load %arg15[%c0_116, %c0_117] : memref<1x32xf32, #tpu.memory_space<vmem>>, vector<1x32xf32>
      %c0_118 = arith.constant 0 : index
      %c0_119 = arith.constant 0 : index
      %247 = vector.load %arg16[%c0_118, %c0_119] : memref<1x32xf32, #tpu.memory_space<vmem>>, vector<1x32xf32>
      %cst_120 = arith.constant dense<0.000000e+00> : vector<32xf32>
      %248 = vector.multi_reduction <add>, %240, %cst_120 [1] : vector<32x32xf32> to vector<32xf32>
      %249 = vector.shape_cast %248 : vector<32xf32> to vector<32x1xf32>
      %cst_121 = arith.constant 3.200000e+01 : f32
      %250 = vector.broadcast %cst_121 : f32 to vector<32x1xf32>
      %251 = arith.divf %249, %250 : vector<32x1xf32>
      %252 = vector.broadcast %251 : vector<32x1xf32> to vector<32x32xf32>
      %253 = arith.subf %240, %252 : vector<32x32xf32>
      %254 = arith.mulf %253, %253 : vector<32x32xf32>
      %cst_122 = arith.constant dense<0.000000e+00> : vector<32xf32>
      %255 = vector.multi_reduction <add>, %254, %cst_122 [1] : vector<32x32xf32> to vector<32xf32>
      %256 = vector.shape_cast %255 : vector<32xf32> to vector<32x1xf32>
      %cst_123 = arith.constant 3.200000e+01 : f32
      %257 = vector.broadcast %cst_123 : f32 to vector<32x1xf32>
      %258 = arith.divf %256, %257 : vector<32x1xf32>
      %259 = vector.broadcast %251 : vector<32x1xf32> to vector<32x32xf32>
      %260 = arith.subf %240, %259 : vector<32x32xf32>
      %cst_124 = arith.constant 9.99999974E-6 : f32
      %261 = vector.broadcast %cst_124 : f32 to vector<32x1xf32>
      %262 = arith.addf %258, %261 : vector<32x1xf32>
      %263 = math.rsqrt %262 : vector<32x1xf32>
      %264 = vector.broadcast %263 : vector<32x1xf32> to vector<32x32xf32>
      %265 = arith.mulf %260, %264 : vector<32x32xf32>
      %266 = vector.broadcast %246 : vector<1x32xf32> to vector<32x32xf32>
      %267 = arith.mulf %265, %266 : vector<32x32xf32>
      %268 = vector.broadcast %247 : vector<1x32xf32> to vector<32x32xf32>
      %269 = arith.addf %267, %268 : vector<32x32xf32>
      %cst_125 = arith.constant 0.000000e+00 : f32
      %270 = vector.broadcast %cst_125 : f32 to vector<32x32xf32>
      %271 = arith.maximumf %269, %270 : vector<32x32xf32>
      %272 = vector.shape_cast %271 : vector<32x32xf32> to vector<4x8x32xf32>
      %273 = vector.extract_strided_slice %272 {offsets = [0, 0, 0], sizes = [1, 8, 32], strides = [1, 1, 1]} : vector<4x8x32xf32> to vector<1x8x32xf32>
      %274 = vector.shape_cast %273 : vector<1x8x32xf32> to vector<8x32xf32>
      %275 = vector.shape_cast %274 : vector<8x32xf32> to vector<1x8x32xf32>
      %c0_126 = arith.constant 0 : index
      %c0_127 = arith.constant 0 : index
      %c0_128 = arith.constant 0 : index
      %276 = vector.load %arg17[%c0_126, %c0_127, %c0_128] : memref<1x8x128xf32, #tpu.memory_space<vmem>>, vector<1x8x32xf32>
      tpu.vector_store %arg17[%c0_126, %c0_127, %c0_128], %275 {strides = array<i32>} : memref<1x8x128xf32, #tpu.memory_space<vmem>>, vector<1x8x32xf32>,
      %277 = vector.extract_strided_slice %272 {offsets = [1, 0, 0], sizes = [1, 8, 32], strides = [1, 1, 1]} : vector<4x8x32xf32> to vector<1x8x32xf32>
      %278 = vector.shape_cast %277 : vector<1x8x32xf32> to vector<8x32xf32>
      %279 = vector.shape_cast %278 : vector<8x32xf32> to vector<1x8x32xf32>
      %c0_129 = arith.constant 0 : index
      %c0_130 = arith.constant 0 : index
      %c32_131 = arith.constant 32 : index
      %280 = vector.load %arg17[%c0_129, %c0_130, %c32_131] : memref<1x8x128xf32, #tpu.memory_space<vmem>>, vector<1x8x32xf32>
      tpu.vector_store %arg17[%c0_129, %c0_130, %c32_131], %279 {strides = array<i32>} : memref<1x8x128xf32, #tpu.memory_space<vmem>>, vector<1x8x32xf32>,
      %281 = vector.extract_strided_slice %272 {offsets = [2, 0, 0], sizes = [1, 8, 32], strides = [1, 1, 1]} : vector<4x8x32xf32> to vector<1x8x32xf32>
      %282 = vector.shape_cast %281 : vector<1x8x32xf32> to vector<8x32xf32>
      %283 = vector.shape_cast %282 : vector<8x32xf32> to vector<1x8x32xf32>
      %c0_132 = arith.constant 0 : index
      %c0_133 = arith.constant 0 : index
      %c64_134 = arith.constant 64 : index
      %284 = vector.load %arg17[%c0_132, %c0_133, %c64_134] : memref<1x8x128xf32, #tpu.memory_space<vmem>>, vector<1x8x32xf32>
      tpu.vector_store %arg17[%c0_132, %c0_133, %c64_134], %283 {strides = array<i32>} : memref<1x8x128xf32, #tpu.memory_space<vmem>>, vector<1x8x32xf32>,
      %285 = vector.extract_strided_slice %272 {offsets = [3, 0, 0], sizes = [1, 8, 32], strides = [1, 1, 1]} : vector<4x8x32xf32> to vector<1x8x32xf32>
      %286 = vector.shape_cast %285 : vector<1x8x32xf32> to vector<8x32xf32>
      %287 = vector.shape_cast %286 : vector<8x32xf32> to vector<1x8x32xf32>
      %c0_135 = arith.constant 0 : index
      %c0_136 = arith.constant 0 : index
      %c96_137 = arith.constant 96 : index
      %288 = vector.load %arg17[%c0_135, %c0_136, %c96_137] : memref<1x8x128xf32, #tpu.memory_space<vmem>>, vector<1x8x32xf32>
      tpu.vector_store %arg17[%c0_135, %c0_136, %c96_137], %287 {strides = array<i32>} : memref<1x8x128xf32, #tpu.memory_space<vmem>>, vector<1x8x32xf32>,
    } else {
    }
    return
  }
  func.func @transform_0(%arg0: i32, %arg1: i32) -> (i32, i32, i32, i32) {
    %c0_i32 = arith.constant 0 : i32
    %c0_i32_0 = arith.constant 0 : i32
    %c0_i32_1 = arith.constant 0 : i32
    %c0_i32_2 = arith.constant 0 : i32
    return %c0_i32, %arg0, %c0_i32_0, %c0_i32_1 : i32, i32, i32, i32
  }
  func.func @transform_1(%arg0: i32, %arg1: i32) -> (i32, i32) {
    %c0_i32 = arith.constant 0 : i32
    %c0_i32_0 = arith.constant 0 : i32
    %c0_i32_1 = arith.constant 0 : i32
    return %c0_i32, %c0_i32_0 : i32, i32
  }
  func.func @transform_2(%arg0: i32, %arg1: i32) -> (i32, i32) {
    %c0_i32 = arith.constant 0 : i32
    %c0_i32_0 = arith.constant 0 : i32
    %c0_i32_1 = arith.constant 0 : i32
    return %c0_i32, %c0_i32_0 : i32, i32
  }
  func.func @transform_3(%arg0: i32, %arg1: i32) -> (i32, i32, i32, i32) {
    %c0_i32 = arith.constant 0 : i32
    %c0_i32_0 = arith.constant 0 : i32
    %c0_i32_1 = arith.constant 0 : i32
    %c0_i32_2 = arith.constant 0 : i32
    return %arg1, %c0_i32, %c0_i32_0, %c0_i32_1 : i32, i32, i32, i32
  }
  func.func @transform_4(%arg0: i32, %arg1: i32) -> (i32, i32, i32, i32) {
    %c0_i32 = arith.constant 0 : i32
    %c0_i32_0 = arith.constant 0 : i32
    %c0_i32_1 = arith.constant 0 : i32
    %c0_i32_2 = arith.constant 0 : i32
    return %arg1, %c0_i32, %c0_i32_0, %c0_i32_1 : i32, i32, i32, i32
  }
  func.func @transform_5(%arg0: i32, %arg1: i32) -> (i32, i32, i32) {
    %c0_i32 = arith.constant 0 : i32
    %c0_i32_0 = arith.constant 0 : i32
    %c0_i32_1 = arith.constant 0 : i32
    return %arg1, %c0_i32, %c0_i32_0 : i32, i32, i32
  }
  func.func @transform_6(%arg0: i32, %arg1: i32) -> (i32, i32, i32) {
    %c0_i32 = arith.constant 0 : i32
    %c0_i32_0 = arith.constant 0 : i32
    %c0_i32_1 = arith.constant 0 : i32
    return %arg1, %c0_i32, %c0_i32_0 : i32, i32, i32
  }
  func.func @transform_7(%arg0: i32, %arg1: i32) -> (i32, i32, i32) {
    %c0_i32 = arith.constant 0 : i32
    %c0_i32_0 = arith.constant 0 : i32
    %c0_i32_1 = arith.constant 0 : i32
    return %arg1, %c0_i32, %c0_i32_0 : i32, i32, i32
  }
  func.func @transform_8(%arg0: i32, %arg1: i32) -> (i32, i32, i32) {
    %c0_i32 = arith.constant 0 : i32
    %c0_i32_0 = arith.constant 0 : i32
    %c0_i32_1 = arith.constant 0 : i32
    return %arg1, %c0_i32, %c0_i32_0 : i32, i32, i32
  }
  func.func @transform_9(%arg0: i32, %arg1: i32) -> (i32, i32, i32) {
    %c0_i32 = arith.constant 0 : i32
    %c0_i32_0 = arith.constant 0 : i32
    %c0_i32_1 = arith.constant 0 : i32
    return %arg1, %c0_i32, %c0_i32_0 : i32, i32, i32
  }
  func.func @transform_10(%arg0: i32, %arg1: i32) -> (i32, i32, i32) {
    %c0_i32 = arith.constant 0 : i32
    %c0_i32_0 = arith.constant 0 : i32
    %c0_i32_1 = arith.constant 0 : i32
    return %arg1, %c0_i32, %c0_i32_0 : i32, i32, i32
  }
  func.func @transform_11(%arg0: i32, %arg1: i32) -> (i32, i32, i32) {
    %c0_i32 = arith.constant 0 : i32
    %c0_i32_0 = arith.constant 0 : i32
    %c0_i32_1 = arith.constant 0 : i32
    return %arg1, %c0_i32, %c0_i32_0 : i32, i32, i32
  }
  func.func @transform_12(%arg0: i32, %arg1: i32) -> (i32, i32, i32) {
    %c0_i32 = arith.constant 0 : i32
    %c0_i32_0 = arith.constant 0 : i32
    %c0_i32_1 = arith.constant 0 : i32
    return %arg1, %c0_i32, %c0_i32_0 : i32, i32, i32
  }
  func.func @transform_13(%arg0: i32, %arg1: i32) -> (i32, i32) {
    %c0_i32 = arith.constant 0 : i32
    %c0_i32_0 = arith.constant 0 : i32
    %c0_i32_1 = arith.constant 0 : i32
    return %c0_i32, %c0_i32_0 : i32, i32
  }
  func.func @transform_14(%arg0: i32, %arg1: i32) -> (i32, i32) {
    %c0_i32 = arith.constant 0 : i32
    %c0_i32_0 = arith.constant 0 : i32
    %c0_i32_1 = arith.constant 0 : i32
    return %c0_i32, %c0_i32_0 : i32, i32
  }
  func.func @transform_15(%arg0: i32, %arg1: i32) -> (i32, i32, i32) {
    %c0_i32 = arith.constant 0 : i32
    %c0_i32_0 = arith.constant 0 : i32
    %c0_i32_1 = arith.constant 0 : i32
    return %arg0, %c0_i32, %c0_i32_0 : i32, i32, i32
  }
  func.func @transform_16(%arg0: i32, %arg1: i32) -> (i32, i32, i32, i32) {
    %c0_i32 = arith.constant 0 : i32
    %c0_i32_0 = arith.constant 0 : i32
    %c0_i32_1 = arith.constant 0 : i32
    return %arg1, %arg0, %c0_i32, %c0_i32_0 : i32, i32, i32, i32
  }
}

</mosaic_0001>

<bundles_post_ra>
// kernel: transformer_forward.1
= control target key start
LH: loop header
LB: loop body
LE: loop exit
PB: predicated region body
PF: predicated region fallthrough
CT: control target
= control target key end

     0   :  { %s6434_s0 = inlined_call_operand.vmem [shape: f32[4,2,8,3], index: 0, kind: input, shape index: {}]   ;;  %s6435_s1 = inlined_call_operand.vmem [shape: bf16[3,32], index: 1, kind: input, shape index: {}]   ;;  %s6436_s2 = inlined_call_operand.vmem [shape: f32[8,32], index: 2, kind: input, shape index: {}]   ;;  %s6437_s3 = inlined_call_operand.vmem [shape: bf16[2,4,32,96], index: 3, kind: input, shape index: {}]   ;;  %s6438_s4 = inlined_call_operand.vmem [shape: f32[2,4,1,96], index: 4, kind: input, shape index: {}]   ;;  %s6439_s5 = inlined_call_operand.vmem [shape: bf16[2,32,32], index: 5, kind: input, shape index: {}]   ;;  %s6440_s6 = inlined_call_operand.vmem [shape: f32[2,1,32], index: 6, kind: input, shape index: {}]   ;;  %s6441_s7 = inlined_call_operand.vmem [shape: f32[2,1,32], index: 7, kind: input, shape index: {}]   ;;  %s6442_s8 = inlined_call_operand.vmem [shape: f32[2,1,32], index: 8, kind: input, shape index: {}]   ;;  %s6443_s9 = inlined_call_operand.vmem [shape: f32[2,1,32], index: 9, kind: input, shape index: {}]   ;;  %s6444_s10 = inlined_call_operand.vmem [shape: f32[2,1,32], index: 10, kind: input, shape index: {}]   ;;  %s6445_s11 = inlined_call_operand.vmem [shape: bf16[2,32,128], index: 11, kind: input, shape index: {}]   ;;  %s6446_s12 = inlined_call_operand.vmem [shape: bf16[2,128,32], index: 12, kind: input, shape index: {}]   ;;  %s6447_s13 = inlined_call_operand.vmem [shape: f32[1,32], index: 13, kind: input, shape index: {}]   ;;  %s6448_s14 = inlined_call_operand.vmem [shape: f32[1,32], index: 14, kind: input, shape index: {}]   ;;  %s6449_s15 = inlined_call_operand.vmem [shape: f32[2,8,128], index: 15, kind: output, shape index: {0}]   ;;  %s6450_s16 = inlined_call_operand.vmem [shape: bf16[2,2,8,128], index: 16, kind: output, shape index: {1}]  }
   0x1   :  { %6458 = sst [smem:[#allocation14_spill]] %s6434_s0 }
   0x2   :  { %6459 = sst [smem:[#allocation15_spill]] %s6435_s1 }
   0x3   :  { %6460 = sst [smem:[#allocation16_spill]] %s6436_s2 }
   0x4   :  { %6461 = sst [smem:[#allocation17_spill]] %s6437_s3 }
   0x5   :  { %6462 = sst [smem:[#allocation18_spill]] %s6438_s4 }
   0x6   :  { %6463 = sst [smem:[#allocation19_spill]] %s6439_s5 }
   0x7   :  { %6464 = sst [smem:[#allocation20_spill]] %s6447_s13 }
   0x8   :  { %6465 = sst [smem:[#allocation21_spill]] %s6448_s14 }
   0x9   :  { %6466 = sst [smem:[#allocation22_spill]] %s6450_s16 }
   0xa   :  { %s5555_s21 = smov 0   ;;  %s5557_s22 = smov 0  }
   0xb   :  { %s5559_s23 = smov 0   ;;  %s5561_s24 = smov 0  }
   0xc   :  { %s5563_s25 = smov 0   ;;  %s5565_s26 = smov 0  }
   0xd   :  { %s5567_s27 = smov 0  }
   0xe LB: > { %6467 = sst [smem:[#allocation5_spill]] %s5427_s22  ;;  %s36_s28 = sadd.s32 1, %s5439_s25  ;;  %s5447_s27 = sphi %s5567_s27, %s27_s27   ;;  %s5443_s26 = sphi %s5565_s26, %s6499_s26   ;;  %s5439_s25 = sphi %s5563_s25, %s6498_s25   ;;  %s5435_s24 = sphi %s5561_s24, %s6497_s24   ;;  %s5431_s23 = sphi %s5559_s23, %s6496_s23   ;;  %s5427_s22 = sphi %s5557_s22, %s6495_s22   ;;  %s5423_s21 = sphi %s5555_s21, %s6494_s21  }
   0xf   : > { %6468 = sst [smem:[#allocation6_spill]] %s5431_s23  ;;  %p37_p0 = scmp.ge.s32.totalorder %s36_s28, 2 }
  0x10   : > { %6469 = sst [smem:[#allocation7_spill]] %s5439_s25  ;;  %s39_s29 = sadd.s32 1, %s5443_s26 }
  0x11   : > { %6470 = sst [smem:[#allocation8_spill]] %s5443_s26  ;;  %p53_p1 = scmp.ne.s32.totalorder %s5427_s22, %s5423_s21 }
  0x12   : > { %6471 = sst [smem:[#allocation9_spill]] %s5447_s27  ;;  %p54_p2 = scmp.eq.s32.totalorder %s5447_s27, 0 }
  0x13   : > { %s6501_s28 = smov (%p37_p0, %s36_s28), 0  ;;  %s6503_s29 = smov (!%p37_p0, %s39_s29), %s5443_s26 }
  0x14   : > { %6472 = sst [smem:[#allocation10_spill]] %s6501_s28  ;;  %p55_p3 = por %p54_p2, %p53_p1 }
  0x15   : > { %p41_p4 = scmp.ge.s32.totalorder %s6503_s29, 2  ;;  %s46_s0 = sadd.s32 1, %s5427_s22 }
  0x16   : > { %p4729_p6 = scmp.ge.s32.totalorder %s5447_s27, 4 }
  0x17   : > { %s6505_s29 = smov (%p41_p4, %s6503_s29), 0 }
  0x18   : > { %6473 = sst [smem:[#allocation11_spill]] %s6505_s29  ;;  %s43_s30 = ssub.s32 %s5443_s26, %s6505_s29 }
  0x19   : > { %p44_p5 = scmp.eq.s32.totalorder %s43_s30, 0  ;;  %489 = sbr.rel (%p4729_p6) target bundleno = 44 (0x2c), region = 32 }
  0x1b   : > { %s5604_s17 = scalar_select %p44_p5, %s5427_s22, %s46_s0  }
  0x1d   : > { %6474 = sst [smem:[#allocation12_spill]] %s5604_s17 }
  0x20   : > { %492 = sbr.rel (!%p55_p3) target bundleno = 44 (0x2c), region = 36  ;;  %s494_s18 = sand.u32 (%p55_p3), 1, %s5427_s22  }
  0x21   : > { %s4731_s19 = sshll.u32 (%p55_p3), %s5443_s26, 3  ;;  %s4730_s20 = sshll.u32 (%p55_p3), %s494_s18, 5 }
  0x22   : > { %s6475_s14 = sld [smem:[#allocation14_spill]] (%p55_p3)  ;;  %s496_s29 = scalar_lea.vmem (%p55_p3), [#allocation4], %s4730_s20 }
  0x28   : > { %s498_s13 = scalar_lea.vmem %s6475_s14, %s4731_s19 }
  0x29   : > { %v532_v0 = vld [vmem:[%s498_s13] sm:$0xff]  ;;  %v534_v1 = vld [vmem:[%s498_s13 + $0x10] sm:$0xff] }
  0x2a   : > { %v536_v2 = vld [vmem:[%s498_s13 + $0x20] sm:$0xff]  ;;  %533 = vst [vmem:[%s496_s29] sm:$0xff] %v532_v0  ;;  %535 = vst [vmem:[%s496_s29 + $0x8] sm:$0xff] %v534_v1  ;;  %v538_v3 = vld [vmem:[%s498_s13 + $0x30] sm:$0xff] }
  0x2b   : > { %537 = vst [vmem:[%s496_s29 + $0x10] sm:$0xff] %v536_v2  ;;  %539 = vst [vmem:[%s496_s29 + $0x18] sm:$0xff] %v538_v3 }
  0x2c PF: > { %p4732_p7 = scmp.ge.s32.totalorder %s5447_s27, 1  ;;  %p613_p8 = scmp.lt.s32.totalorder %s5447_s27, 5 }
  0x2e   : > { %p614_p9 = pnand %p4732_p7, %p613_p8 }
  0x30   : > { %617 = sbr.rel (%p614_p9) target bundleno = 3397 (0xd45), region = 114 }
  0x37   : > { %s620_s14 = sand.u32 1, %s5423_s21   ;;  %p715_p10 = scmp.lt.s32.totalorder %s5431_s23, 1 }
  0x38   : > { %s4733_s25 = sshll.u32 %s620_s14, 5  ;;  %p754_p11 = scmp.lt.s32.totalorder %s5435_s24, 1 }
  0x39   : > { %s5618_s28 = scalar_select %p715_p10, %s5431_s23, 1 }
  0x3a   : > { %s6507_s24 = smov (!%p754_p11, %s5435_s24), 1  ;;  %s6476_s3 = sld [smem:[#allocation17_spill]] }
  0x3b   : > { %s4854_s13 = sshll.u32 %s5618_s28, 6  ;;  %s4736_s29 = sshll.u32 %s5618_s28, 2 }
  0x3c   : > { %s6477_s4 = sld [smem:[#allocation18_spill]]  ;;  %s4855_s14 = sshll.u32 %s5618_s28, 4 }
  0x3d   : > { %s6479_s5 = sld [smem:[#allocation19_spill]]  ;;  %s5662_s27 = scalar_lea.vmem %s6445_s11, %s4855_s14 }
  0x3e   : > { %s5667_s23 = scalar_lea.vmem %s6446_s12, %s4854_s13  ;;  %s4744_s19 = sshll.u32 %s5618_s28, 1 }
  0x3f   : > { %s6480_s30 = sld [smem:[#allocation22_spill]] }
  0x40   : > { %s5626_s21 = scalar_lea.vmem %s6476_s3, %s4854_s13  ;;  %s4743_s3 = sshll.u32 %s6507_s24, 3 }
  0x41   : > { %s6481_s2 = sld [smem:[#allocation6_spill]] }
  0x42   : > { %s5631_s20 = scalar_lea.vmem %s6477_s4, %s4736_s29  ;;  %s5672_s29 = scalar_lea.vmem %s6449_s15, %s4743_s3 }
  0x43   : > { %6478 = sst [smem:[#allocation13_spill]] %s5631_s20  ;;  %s5641_s1 = scalar_lea.vmem %s6479_s5, %s4855_s14 }
  0x44   : > { %s763_s4 = sadd.s32 %s4744_s19, %s6507_s24  ;;  %s622_s14 = scalar_lea.vmem [#allocation4], %s4733_s25 }
  0x45   : > { %s4745_s20 = sshll.u32 %s763_s4, 2 }
  0x46   : > { %s5678_s22 = scalar_lea.vmem %s6480_s30, %s4745_s20 }
  0x47   : > { %p4746_p12 = scmp.ne.s32.totalorder %s6481_s2, 0 }
  0x48   : > { %s6482_s16 = sld [smem:[#allocation15_spill]] (!%p4746_p12)  ;;  %vm785_vm0 = vcmask (!%p4746_p12), 1040384   ;;  %vm786_vm1 = vcmask (!%p4746_p12), 1041408   ;;  %v771_v5 = vld [vmem:[%s622_s14] sm:$0xff] (!%p4746_p12)  ;;  %v5449_v6 = vmov (!%p4746_p12), 65535   ;;  %v772_v8 = vld [vmem:[%s622_s14 + $0x8] sm:$0xff] (!%p4746_p12) }
  0x49   : > { %770 = sbr.rel (%p4746_p12) target bundleno = 303 (0x12f), region = 122  ;;  %v787_v7 = vsel (!%p4746_p12), %vm785_vm0, 4294967295, %v5449_v6  ;;  %vm778_vm2 = vcmask (!%p4746_p12), 23552   ;;  %v776_v10 = vpack.c.bf16 (!%p4746_p12), %v772_v8, %v771_v5  ;;  %v773_v11 = vld [vmem:[%s622_s14 + $0x10] sm:$0xff] (!%p4746_p12)  ;;  %v774_v12 = vld [vmem:[%s622_s14 + $0x18] sm:$0xff] (!%p4746_p12)  ;;  %s6483_s25 = sld [smem:[#allocation16_spill]] (!%p4746_p12) }
  0x4a   : > { %v788_v9 = vsel (!%p4746_p12), %vm786_vm1, %v787_v7, 0  ;;  %v777_v14 = vpack.c.bf16 (!%p4746_p12), %v774_v12, %v773_v11  ;;  %vm846_vm3 = vcmask (!%p4746_p12), 261120  }
  0x4b   : > { %4972 = vmatprep.mubr.msk.bf16.mxu0 (!%p4746_p12), %vm778_vm2, %v776_v10 }
  0x4e   : > { %v775_v4 = vld [vmem:[%s6482_s16] sm:$0x3] (!%p4746_p12) }
  0x4f   : > { %v790_v13 = vand.u32 (!%p4746_p12), %v788_v9, %v775_v4  ;;  %v841_v15 = vld [vmem:[%s6483_s25] sm:$0xff] (!%p4746_p12) }
  0x51   : > { %4970 = vmatprep.subr.bf16.mxu0 %v790_v13 }
  0x52   : > { %4971 = vmatpush3.bf16.msra.mxu0 %v790_v13 }
  0x55   : > { %4973 = vmatmul.mubr.msk.bf16.vlgmr.msra.gmra.mrb[0].mxu0 %vm778_vm2, %v777_v14 }
 0x128   : > { %v4974_v16 = vpop.f32.mrb[0].mxu0 }
 0x129   : > { %v844_v17 = vadd.f32 %v4974_v16, %v841_v15  ;;  %v826_v18 = vpop.f32.mrb[1].mxu0 }
 0x12a   : > { %v842_v19 = vadd.f32 %v841_v15, %v826_v18  ;;  %v4975_v20 = vpop.f32.mrb[2].mxu0 }
 0x12b   : > { %849 = vst.msk [vmem:[#allocation2 + $0x10] sm:$0xff] %vm846_vm3, %v844_v17  ;;  %v845_v21 = vadd.f32 %v4975_v20, %v841_v15  ;;  %v829_v22 = vpop.f32.mrb[3].mxu0 }
 0x12c   : > { %847 = vst.msk [vmem:[#allocation2] sm:$0xff] %vm846_vm3, %v842_v19  ;;  %v843_v23 = vadd.f32 %v841_v15, %v829_v22 }
 0x12d   : > { %850 = vst.msk [vmem:[#allocation2 + $0x18] sm:$0xff] %vm846_vm3, %v845_v21 }
 0x12e   : > { %848 = vst.msk [vmem:[#allocation2 + $0x8] sm:$0xff] %vm846_vm3, %v843_v23 }
 0x12f PF: > { %v5281_v24 = vld [vmem:[%s5626_s21] sm:$0xff]   ;;  %v5450_v25 = vmov 0.0   ;;  %v5282_v26 = vld [vmem:[%s5626_s21 + $0x8] sm:$0xff]   ;;  %vm5451_vm4 = vmmov 0   ;;  %vm915_vm5 = vcmask 261120   ;;  %v5283_v29 = vld [vmem:[%s5626_s21 + $0x10] sm:$0xff]   ;;  %s6485_s2 = scalar_lea.vmem %s6440_s6, %s5618_s28  ;;  %s6486_s13 = scalar_lea.vmem %s6441_s7, %s5618_s28 }
 0x130   : > { %4976 = vmatprep.subr.bf16.mxu1 %v5450_v25  ;;  %5008 = vmatprep.subr.mxu0 %v5450_v25  ;;  %v5284_v30 = vld [vmem:[%s5626_s21 + $0x18] sm:$0xff]   ;;  %v5285_v32 = vld [vmem:[%s5626_s21 + $0x20] sm:$0xff]   ;;  %v5286_v34 = vld [vmem:[%s5626_s21 + $0x28] sm:$0xff]   ;;  %s6484_s30 = sld [smem:[#allocation13_spill]]  ;;  %s5453_s18 = smov 120   ;;  %vm1154_vm6 = vcmask 64512  }
 0x131   : > { %4977 = vmatpush3.bf16.msra.mxu1 %v5281_v24  ;;  %4980 = vmatprep.mubr.msk.bf16.mxu1 %vm5451_vm4, %v5450_v25  ;;  %v5287_v37 = vld [vmem:[%s5626_s21 + $0x30] sm:$0xff]   ;;  %v5288_v38 = vld [vmem:[%s5626_s21 + $0x38] sm:$0xff]   ;;  %s5452_s21 = smov 104   ;;  %s5454_s17 = smov 112   ;;  %vm2546_vm7 = vcmask 60416   ;;  %vm3919_vm8 = vcmask 130112  }
 0x132   : > { %4978 = vmatprep.subr.bf16.mxu1 %v5450_v25  ;;  %5010 = vmatprep.mubr.msk.f32.mxu0 %vm5451_vm4, %v5450_v25  ;;  %v853_v35 = vld [vmem:[#allocation2 + $0x10] sm:$0xff]  ;;  %s5455_s3 = smov 96   ;;  %s5456_s0 = smov 64   ;;  %vm3940_vm9 = vcmask 195712   ;;  %vm3961_vm10 = vcmask 261312   ;;  %vm2555_vm11 = vcmask 126016  }
 0x133   : > { %v851_v27 = vld [vmem:[#allocation2] sm:$0xff]  ;;  %v873_v36 = vpack.c.bf16 %v853_v35, %v853_v35  ;;  %s5457_s19 = smov 8   ;;  %s5458_s20 = smov 16   ;;  %vm2564_vm12 = vcmask 191616   ;;  %vm2573_vm13 = vcmask 257216   ;;  %vm2582_vm14 = vcmask 322816  }
 0x134   : > { %v871_v28 = vpack.c.bf16 %v851_v27, %v851_v27  ;;  %v854_v39 = vld [vmem:[#allocation2 + $0x18] sm:$0xff]  ;;  %s5459_s26 = smov 24   ;;  %s6487_s24 = scalar_lea.vmem %s6442_s8, %s5618_s28  ;;  %vm2591_vm15 = vcmask 388416   ;;  %vm2600_vm0 = vcmask 454016   ;;  %vm2609_vm1 = vcmask 519616  }
 0x135   : > { %4979 = vmatpush3.bf16.msra.mxu1 %v5282_v26  ;;  %v852_v31 = vld [vmem:[#allocation2 + $0x8] sm:$0xff]  ;;  %v874_v40 = vpack.c.bf16 %v854_v39, %v854_v39  ;;  %s5461_s25 = smov 48   ;;  %vm2618_vm2 = vcmask 585216   ;;  %vm2627_vm3 = vcmask 650816   ;;  %s6489_s14 = scalar_lea.vmem %s6444_s10, %s5618_s28 }
 0x136   : > { %4984 = vmatprep.subr.bf16.mxu1 %v5450_v25  ;;  %v872_v33 = vpack.c.bf16 %v852_v31, %v852_v31  ;;  %v4749_v41 = vld [vmem:[%s6484_s30] ss:$0 sm:$0xff]  ;;  %v4750_v47 = vld [vmem:[%s6484_s30 + $0x1] ss:$0 sm:$0xff]  ;;  %v4751_v53 = vld [vmem:[%s6484_s30 + $0x2] ss:$0 sm:$0xff] }
 0x137   : > { %v4752_v59 = vld [vmem:[%s6484_s30 + $0x3] ss:$0 sm:$0xff]  ;;  %s5462_s30 = smov 40  }
 0x138   : > { %4981 = vmatmul.mubr.msk.bf16.vlgmr.msra.gmra.mrb[0].mxu1 %vm915_vm5, %v871_v28 }
 0x139   : > { %4985 = vmatpush3.bf16.msra.mxu1 %v5283_v29  ;;  %4988 = vmatprep.mubr.msk.bf16.mxu1 %vm5451_vm4, %v5450_v25 }
 0x13a   : > { %4986 = vmatprep.subr.bf16.mxu1 %v5450_v25 }
 0x13d   : > { %4987 = vmatpush3.bf16.msra.mxu1 %v5284_v30 }
 0x13e   : > { %4992 = vmatprep.subr.bf16.mxu1 %v5450_v25 }
 0x140   : > { %4989 = vmatmul.mubr.msk.bf16.vlgmr.msra.gmra.mrb[4].mxu1 %vm915_vm5, %v872_v33 }
 0x141   : > { %4993 = vmatpush3.bf16.msra.mxu1 %v5285_v32  ;;  %4996 = vmatprep.mubr.msk.bf16.mxu1 %vm5451_vm4, %v5450_v25 }
 0x142   : > { %4994 = vmatprep.subr.bf16.mxu1 %v5450_v25 }
 0x145   : > { %4995 = vmatpush3.bf16.msra.mxu1 %v5286_v34 }
 0x146   : > { %5000 = vmatprep.subr.bf16.mxu1 %v5450_v25 }
 0x148   : > { %4997 = vmatmul.mubr.msk.bf16.vlgmr.msra.gmra.mrb[8].mxu1 %vm915_vm5, %v873_v36 }
 0x149   : > { %5001 = vmatpush3.bf16.msra.mxu1 %v5287_v37  ;;  %5004 = vmatprep.mubr.msk.bf16.mxu1 %vm5451_vm4, %v5450_v25 }
 0x14a   : > { %5002 = vmatprep.subr.bf16.mxu1 %v5450_v25 }
 0x14d   : > { %5003 = vmatpush3.bf16.msra.mxu1 %v5288_v38 }
 0x14e   : > { %5013 = vmatprep.subr.mxu1 %v5450_v25 }
 0x150   : > { %5005 = vmatmul.mubr.msk.bf16.vlgmr.msra.gmra.mrb[12].mxu1 %vm915_vm5, %v874_v40 }
 0x151   : > { %5015 = vmatprep.mubr.msk.f32.mxu1 %vm5451_vm4, %v5450_v25 }
 0x20b   : > { %v953_v42 = vpop.f32.mrb[0].mxu1 }
 0x20c   : > { %v5722_v43 = vadd.f32 %v4749_v41, %v953_v42  ;;  %v4982_v44 = vpop.f32.mrb[1].mxu1 }
 0x20d   : > { %v956_v45 = vpop.f32.mrb[2].mxu1 }
 0x20e   : > { %1144 = vrot.lane.b32.xlu1 %v5722_v43, %s5452_s21  ;;  %1128 = vrot.lane.b32.xlu0 %v5722_v43, %s5453_s18  ;;  %v4983_v46 = vpop.f32.mrb[3].mxu1 }
 0x212   : > { %1136 = vrot.lane.b32.xlu0 %v5722_v43, %s5454_s17 }
 0x213   : > { %v1008_v48 = vpop.f32.mrb[4].mxu1 }
 0x214   : > { %v5731_v49 = vadd.f32 %v4750_v47, %v1008_v48  ;;  %v4990_v50 = vpop.f32.mrb[5].mxu1 }
 0x215   : > { %v1011_v51 = vpop.f32.mrb[6].mxu1 }
 0x216   : > { %1130 = vrot.lane.b32.xlu1 %v5731_v49, %s5453_s18  ;;  %v4991_v52 = vpop.f32.mrb[7].mxu1  ;;  %1138 = vrot.lane.b32.xlu0 %v5731_v49, %s5454_s17 }
 0x21a   : > { %1146 = vrot.lane.b32.xlu1 %v5731_v49, %s5452_s21 }
 0x21b   : > { %v1063_v54 = vpop.f32.mrb[8].mxu1 }
 0x21c   : > { %v5740_v55 = vadd.f32 %v4751_v53, %v1063_v54  ;;  %v4998_v56 = vpop.f32.mrb[9].mxu1 }
 0x21d   : > { %v1066_v57 = vpop.f32.mrb[10].mxu1 }
 0x21e   : > { %1132 = vrot.lane.b32.xlu0 %v5740_v55, %s5453_s18  ;;  %v4999_v58 = vpop.f32.mrb[11].mxu1  ;;  %1140 = vrot.lane.b32.xlu1 %v5740_v55, %s5454_s17 }
 0x222   : > { %1148 = vrot.lane.b32.xlu0 %v5740_v55, %s5452_s21 }
 0x223   : > { %v1118_v60 = vpop.f32.mrb[12].mxu1 }
 0x224   : > { %v5749_v61 = vadd.f32 %v4752_v59, %v1118_v60  ;;  %v5006_v62 = vpop.f32.mrb[13].mxu1 }
 0x225   : > { %v1121_v63 = vpop.f32.mrb[14].mxu1 }
 0x226   : > { %1142 = vrot.lane.b32.xlu0 %v5749_v61, %s5454_s17  ;;  %1134 = vrot.lane.b32.xlu1 %v5749_v61, %s5453_s18  ;;  %v5007_v0 = vpop.f32.mrb[15].mxu1 }
 0x22a   : > { %1152 = vrot.lane.b32.xlu0 %v5722_v43, %s5455_s3  ;;  %1150 = vrot.lane.b32.xlu1 %v5749_v61, %s5452_s21 }
 0x280   : > { %v1129_v1 = vpop.permute.xlu0 %1128  ;;  %v1145_v2 = vpop.permute.xlu1 %1144 }
 0x281   : > { %1229 = vrot.lane.b32.xlu1 %v1129_v1, %s5455_s3 }
 0x284   : > { %v1137_v3 = vpop.permute.xlu0 %1136 }
 0x285   : > { %1305 = vrot.lane.b32.xlu0 %v1137_v3, %s5455_s3  ;;  %1381 = vrot.lane.b32.xlu1 %v1145_v2, %s5455_s3 }
 0x288   : > { %v1131_v4 = vpop.permute.xlu1 %1130  ;;  %v5765_v5 = vpop.permute.xlu0 %1138 }
 0x289   : > { %1457 = vrot.lane.b32.xlu0 %v5731_v49, %s5455_s3  ;;  %1533 = vrot.lane.b32.xlu1 %v1131_v4, %s5455_s3 }
 0x28c   : > { %v5767_v6 = vpop.permute.xlu1 %1146 }
 0x28d   : > { %1609 = vrot.lane.b32.xlu0 %v5765_v5, %s5455_s3  ;;  %1685 = vrot.lane.b32.xlu1 %v5767_v6, %s5455_s3 }
 0x290   : > { %v5773_v7 = vpop.permute.xlu0 %1132  ;;  %v5779_v8 = vpop.permute.xlu1 %1140 }
 0x291   : > { %1761 = vrot.lane.b32.xlu0 %v5740_v55, %s5455_s3  ;;  %1837 = vrot.lane.b32.xlu1 %v5773_v7, %s5455_s3 }
 0x294   : > { %v5781_v9 = vpop.permute.xlu0 %1148 }
 0x295   : > { %1913 = vrot.lane.b32.xlu0 %v5779_v8, %s5455_s3  ;;  %1989 = vrot.lane.b32.xlu1 %v5781_v9, %s5455_s3 }
 0x298   : > { %v5787_v10 = vpop.permute.xlu0 %1142  ;;  %v5789_v11 = vpop.permute.xlu1 %1134 }
 0x299   : > { %2065 = vrot.lane.b32.xlu0 %v5749_v61, %s5455_s3  ;;  %2141 = vrot.lane.b32.xlu1 %v5789_v11, %s5455_s3 }
 0x29c   : > { %v1153_v12 = vpop.permute.xlu0 %1152  ;;  %v5795_v13 = vpop.permute.xlu1 %1150 }
 0x29d   : > { %2217 = vrot.lane.b32.xlu0 %v5787_v10, %s5455_s3  ;;  %5009 = vmatpush3.xpose.msk.msra.mxu0 %vm1154_vm6, %v1153_v12 }
 0x29e   : > { %2293 = vrot.lane.b32.xlu1 %v5795_v13, %s5455_s3  ;;  %5018 = vmatprep.subr.mxu0 %v5450_v25 }
 0x2a0   : > { %5011 = vmatmul.mubr.msk.f32.vlgmr.msra.gmra.mrb[0].mxu0 %vm1154_vm6, %v5722_v43 }
 0x2a1   : > { %2759 = vrot.lane.b32.xlu0 %v1129_v1, %s5456_s0  ;;  %5020 = vmatprep.mubr.msk.f32.mxu0 %vm5451_vm4, %v5450_v25 }
 0x2a2   : > { %2683 = vrot.lane.b32.xlu1 %v5722_v43, %s5456_s0 }
 0x2a5   : > { %2911 = vrot.lane.b32.xlu0 %v1145_v2, %s5456_s0 }
 0x2a6   : > { %2835 = vrot.lane.b32.xlu1 %v1137_v3, %s5456_s0 }
 0x2a9   : > { %3139 = vrot.lane.b32.xlu0 %v5765_v5, %s5456_s0 }
 0x2aa   : > { %2987 = vrot.lane.b32.xlu1 %v5731_v49, %s5456_s0 }
 0x2ad   : > { %3291 = vrot.lane.b32.xlu0 %v5740_v55, %s5456_s0 }
 0x2ae   : > { %3063 = vrot.lane.b32.xlu1 %v1131_v4, %s5456_s0 }
 0x2b2   : > { %3215 = vrot.lane.b32.xlu1 %v5767_v6, %s5456_s0 }
 0x2b6   : > { %3367 = vrot.lane.b32.xlu1 %v5773_v7, %s5456_s0 }
 0x2f3   : > { %v1230_v14 = vpop.permute.xlu1 %1229 }
 0x2f4   : > { %5014 = vmatpush3.xpose.msk.msra.mxu1 %vm1154_vm6, %v1230_v14 }
 0x2f5   : > { %5023 = vmatprep.subr.mxu1 %v5450_v25 }
 0x2f7   : > { %v1306_v15 = vpop.permute.xlu0 %1305  ;;  %5016 = vmatmul.mubr.msk.f32.vlgmr.msra.gmra.mrb[16].mxu1 %vm1154_vm6, %v1129_v1  ;;  %v1382_v16 = vpop.permute.xlu1 %1381 }
 0x2f8   : > { %5019 = vmatpush3.xpose.msk.msra.mxu0 %vm1154_vm6, %v1306_v15  ;;  %5024 = vmatpush3.xpose.msk.msra.mxu1 %vm1154_vm6, %v1382_v16 }
 0x2f9   : > { %5025 = vmatprep.mubr.msk.f32.mxu1 %vm5451_vm4, %v5450_v25  ;;  %5028 = vmatprep.subr.mxu0 %v5450_v25 }
 0x2fa   : > { %5033 = vmatprep.subr.mxu1 %v5450_v25 }
 0x2fb   : > { %5021 = vmatmul.mubr.msk.f32.vlgmr.msra.gmra.mrb[2].mxu0 %vm1154_vm6, %v1137_v3  ;;  %v1458_v17 = vpop.permute.xlu0 %1457  ;;  %5026 = vmatmul.mubr.msk.f32.vlgmr.msra.gmra.mrb[18].mxu1 %vm1154_vm6, %v1145_v2  ;;  %v1534_v18 = vpop.permute.xlu1 %1533 }
 0x2fc   : > { %5029 = vmatpush3.xpose.msk.msra.mxu0 %vm1154_vm6, %v1458_v17  ;;  %5034 = vmatpush3.xpose.msk.msra.mxu1 %vm1154_vm6, %v1534_v18 }
 0x2fd   : > { %5030 = vmatprep.mubr.msk.f32.mxu0 %vm5451_vm4, %v5450_v25  ;;  %5035 = vmatprep.mubr.msk.f32.mxu1 %vm5451_vm4, %v5450_v25 }
 0x2fe   : > { %5038 = vmatprep.subr.mxu0 %v5450_v25  ;;  %5043 = vmatprep.subr.mxu1 %v5450_v25 }
 0x2ff   : > { %5031 = vmatmul.mubr.msk.f32.vlgmr.msra.gmra.mrb[4].mxu0 %vm1154_vm6, %v5731_v49  ;;  %v1610_v19 = vpop.permute.xlu0 %1609  ;;  %5036 = vmatmul.mubr.msk.f32.vlgmr.msra.gmra.mrb[20].mxu1 %vm1154_vm6, %v1131_v4  ;;  %v1686_v20 = vpop.permute.xlu1 %1685 }
 0x300   : > { %5039 = vmatpush3.xpose.msk.msra.mxu0 %vm1154_vm6, %v1610_v19  ;;  %5044 = vmatpush3.xpose.msk.msra.mxu1 %vm1154_vm6, %v1686_v20 }
 0x301   : > { %5040 = vmatprep.mubr.msk.f32.mxu0 %vm5451_vm4, %v5450_v25  ;;  %5045 = vmatprep.mubr.msk.f32.mxu1 %vm5451_vm4, %v5450_v25 }
 0x302   : > { %5048 = vmatprep.subr.mxu0 %v5450_v25  ;;  %5053 = vmatprep.subr.mxu1 %v5450_v25 }
 0x303   : > { %5041 = vmatmul.mubr.msk.f32.vlgmr.msra.gmra.mrb[6].mxu0 %vm1154_vm6, %v5765_v5  ;;  %v1762_v21 = vpop.permute.xlu0 %1761  ;;  %5046 = vmatmul.mubr.msk.f32.vlgmr.msra.gmra.mrb[22].mxu1 %vm1154_vm6, %v5767_v6  ;;  %v1838_v22 = vpop.permute.xlu1 %1837 }
 0x304   : > { %5049 = vmatpush3.xpose.msk.msra.mxu0 %vm1154_vm6, %v1762_v21  ;;  %5054 = vmatpush3.xpose.msk.msra.mxu1 %vm1154_vm6, %v1838_v22 }
 0x305   : > { %5050 = vmatprep.mubr.msk.f32.mxu0 %vm5451_vm4, %v5450_v25  ;;  %5055 = vmatprep.mubr.msk.f32.mxu1 %vm5451_vm4, %v5450_v25 }
 0x306   : > { %5058 = vmatprep.subr.mxu0 %v5450_v25  ;;  %5063 = vmatprep.subr.mxu1 %v5450_v25 }
 0x307   : > { %5051 = vmatmul.mubr.msk.f32.vlgmr.msra.gmra.mrb[8].mxu0 %vm1154_vm6, %v5740_v55  ;;  %v1914_v23 = vpop.permute.xlu0 %1913  ;;  %5056 = vmatmul.mubr.msk.f32.vlgmr.msra.gmra.mrb[24].mxu1 %vm1154_vm6, %v5773_v7  ;;  %v1990_v24 = vpop.permute.xlu1 %1989 }
 0x308   : > { %5059 = vmatpush3.xpose.msk.msra.mxu0 %vm1154_vm6, %v1914_v23  ;;  %5064 = vmatpush3.xpose.msk.msra.mxu1 %vm1154_vm6, %v1990_v24 }
 0x309   : > { %5060 = vmatprep.mubr.msk.f32.mxu0 %vm5451_vm4, %v5450_v25  ;;  %5065 = vmatprep.mubr.msk.f32.mxu1 %vm5451_vm4, %v5450_v25 }
 0x30a   : > { %5068 = vmatprep.subr.mxu0 %v5450_v25  ;;  %5073 = vmatprep.subr.mxu1 %v5450_v25 }
 0x30b   : > { %5061 = vmatmul.mubr.msk.f32.vlgmr.msra.gmra.mrb[10].mxu0 %vm1154_vm6, %v5779_v8  ;;  %v2066_v26 = vpop.permute.xlu0 %2065  ;;  %5066 = vmatmul.mubr.msk.f32.vlgmr.msra.gmra.mrb[26].mxu1 %vm1154_vm6, %v5781_v9  ;;  %v2142_v27 = vpop.permute.xlu1 %2141 }
 0x30c   : > { %5069 = vmatpush3.xpose.msk.msra.mxu0 %vm1154_vm6, %v2066_v26  ;;  %5074 = vmatpush3.xpose.msk.msra.mxu1 %vm1154_vm6, %v2142_v27 }
 0x30d   : > { %5070 = vmatprep.mubr.msk.f32.mxu0 %vm5451_vm4, %v5450_v25  ;;  %5075 = vmatprep.mubr.msk.f32.mxu1 %vm5451_vm4, %v5450_v25 }
 0x30e   : > { %5078 = vmatprep.subr.mxu0 %v5450_v25  ;;  %5083 = vmatprep.subr.mxu1 %v5450_v25 }
 0x30f   : > { %5071 = vmatmul.mubr.msk.f32.vlgmr.msra.gmra.mrb[12].mxu0 %vm1154_vm6, %v5749_v61  ;;  %v2218_v28 = vpop.permute.xlu0 %2217  ;;  %5076 = vmatmul.mubr.msk.f32.vlgmr.msra.gmra.mrb[28].mxu1 %vm1154_vm6, %v5789_v11 }
 0x310   : > { %v2294_v29 = vpop.permute.xlu1 %2293  ;;  %5079 = vmatpush3.xpose.msk.msra.mxu0 %vm1154_vm6, %v2218_v28  ;;  %5080 = vmatprep.mubr.msk.f32.mxu0 %vm5451_vm4, %v5450_v25 }
 0x311   : > { %5084 = vmatpush3.xpose.msk.msra.mxu1 %vm1154_vm6, %v2294_v29  ;;  %5085 = vmatprep.mubr.msk.f32.mxu1 %vm5451_vm4, %v5450_v25 }
 0x312   : > { %5088 = vmatprep.subr.mxu0 %v5450_v25  ;;  %5093 = vmatprep.subr.mxu1 %v5450_v25 }
 0x313   : > { %5081 = vmatmul.mubr.msk.f32.vlgmr.msra.gmra.mrb[14].mxu0 %vm1154_vm6, %v5787_v10  ;;  %v2760_v30 = vpop.permute.xlu0 %2759 }
 0x314   : > { %5086 = vmatmul.mubr.msk.f32.vlgmr.msra.gmra.mrb[30].mxu1 %vm1154_vm6, %v5795_v13  ;;  %v2684_v31 = vpop.permute.xlu1 %2683  ;;  %5090 = vmatprep.mubr.msk.f32.mxu0 %vm5451_vm4, %v5450_v25 }
 0x315   : > { %5089 = vmatpush3.msra.mxu0 %v2684_v31  ;;  %5094 = vmatpush3.msra.mxu1 %v2760_v30 }
 0x316   : > { %5098 = vmatprep.subr.mxu0 %v5450_v25  ;;  %5095 = vmatprep.mubr.msk.f32.mxu1 %vm5451_vm4, %v5450_v25 }
 0x317   : > { %5103 = vmatprep.subr.mxu1 %v5450_v25  ;;  %v5975_v22 = vpop.permute.xlu0 %2911 }
 0x31b   : > { %v5981_v23 = vpop.permute.xlu0 %3139 }
 0x31f   : > { %v5985_v24 = vpop.permute.xlu0 %3291 }
 0x373   : > { %v5911_v32 = vpop.f32.mrb[0].mxu0 }
 0x374   : > { %v5012_v33 = vpop.f32.mrb[1].mxu0  ;;  %v2369_v34 = vsel %vm1154_vm6, %v5911_v32, -inf }
 0x375   : > { %2370 = vmax.xlane.f32.xlu0 %v2369_v34 }
 0x3ca   : > { %v5915_v35 = vpop.f32.mrb[16].mxu1 }
 0x3cb   : > { %v5017_v36 = vpop.f32.mrb[17].mxu1  ;;  %v2372_v37 = vsel %vm1154_vm6, %v5915_v35, -inf }
 0x3cc   : > { %2373 = vmax.xlane.f32.xlu1 %v2372_v37 }
 0x3ce   : > { %v5919_v38 = vpop.f32.mrb[2].mxu0  ;;  %v5921_v39 = vpop.f32.mrb[18].mxu1 }
 0x3cf   : > { %v5022_v40 = vpop.f32.mrb[3].mxu0  ;;  %v5027_v41 = vpop.f32.mrb[19].mxu1  ;;  %v2375_v42 = vsel %vm1154_vm6, %v5919_v38, -inf  ;;  %v2378_v48 = vsel %vm1154_vm6, %v5921_v39, -inf }
 0x3d0   : > { %2376 = vmax.xlane.f32.xlu0 %v2375_v42 }
 0x3d2   : > { %v5925_v43 = vpop.f32.mrb[4].mxu0  ;;  %v5927_v44 = vpop.f32.mrb[20].mxu1 }
 0x3d3   : > { %v5032_v45 = vpop.f32.mrb[5].mxu0  ;;  %v5037_v46 = vpop.f32.mrb[21].mxu1  ;;  %v2381_v47 = vsel %vm1154_vm6, %v5925_v43, -inf  ;;  %v2384_v54 = vsel %vm1154_vm6, %v5927_v44, -inf }
 0x3d4   : > { %2382 = vmax.xlane.f32.xlu1 %v2381_v47  ;;  %2379 = vmax.xlane.f32.xlu0 %v2378_v48 }
 0x3d6   : > { %v5933_v49 = vpop.f32.mrb[6].mxu0  ;;  %v5935_v50 = vpop.f32.mrb[22].mxu1 }
 0x3d7   : > { %v5042_v51 = vpop.f32.mrb[7].mxu0  ;;  %v5047_v52 = vpop.f32.mrb[23].mxu1  ;;  %v2387_v53 = vsel %vm1154_vm6, %v5933_v49, -inf  ;;  %v2390_v60 = vsel %vm1154_vm6, %v5935_v50, -inf }
 0x3d8   : > { %2388 = vmax.xlane.f32.xlu1 %v2387_v53  ;;  %2385 = vmax.xlane.f32.xlu0 %v2384_v54 }
 0x3da   : > { %v5941_v55 = vpop.f32.mrb[8].mxu0  ;;  %v5943_v56 = vpop.f32.mrb[24].mxu1 }
 0x3db   : > { %v5052_v57 = vpop.f32.mrb[9].mxu0  ;;  %v5057_v58 = vpop.f32.mrb[25].mxu1  ;;  %v2393_v59 = vsel %vm1154_vm6, %v5941_v55, -inf  ;;  %v2396_v3 = vsel %vm1154_vm6, %v5943_v56, -inf }
 0x3dc   : > { %2394 = vmax.xlane.f32.xlu1 %v2393_v59  ;;  %2391 = vmax.xlane.f32.xlu0 %v2390_v60 }
 0x3de   : > { %v5949_v62 = vpop.f32.mrb[10].mxu0  ;;  %v5951_v63 = vpop.f32.mrb[26].mxu1 }
 0x3df   : > { %v5062_v0 = vpop.f32.mrb[11].mxu0  ;;  %v5067_v1 = vpop.f32.mrb[27].mxu1  ;;  %v2399_v2 = vsel %vm1154_vm6, %v5949_v62, -inf  ;;  %v2402_v14 = vsel %vm1154_vm6, %v5951_v63, -inf }
 0x3e0   : > { %2400 = vmax.xlane.f32.xlu1 %v2399_v2  ;;  %2397 = vmax.xlane.f32.xlu0 %v2396_v3 }
 0x3e2   : > { %v5957_v4 = vpop.f32.mrb[12].mxu0  ;;  %v5959_v5 = vpop.f32.mrb[28].mxu1 }
 0x3e3   : > { %v5072_v6 = vpop.f32.mrb[13].mxu0  ;;  %v5077_v7 = vpop.f32.mrb[29].mxu1  ;;  %v2405_v12 = vsel %vm1154_vm6, %v5957_v4, -inf  ;;  %v2408_v19 = vsel %vm1154_vm6, %v5959_v5, -inf }
 0x3e4   : > { %2406 = vmax.xlane.f32.xlu1 %v2405_v12  ;;  %2403 = vmax.xlane.f32.xlu0 %v2402_v14 }
 0x3e6   : > { %v5965_v15 = vpop.f32.mrb[14].mxu0 }
 0x3e7   : > { %v5967_v16 = vpop.f32.mrb[30].mxu1  ;;  %v5082_v17 = vpop.f32.mrb[15].mxu0  ;;  %v2411_v18 = vsel %vm1154_vm6, %v5965_v15, -inf }
 0x3e8   : > { %v5087_v20 = vpop.f32.mrb[31].mxu1  ;;  %2412 = vmax.xlane.f32.xlu1 %v2411_v18  ;;  %2409 = vmax.xlane.f32.xlu0 %v2408_v19  ;;  %v2414_v21 = vsel %vm1154_vm6, %v5967_v16, -inf }
 0x3ec   : > { %2415 = vmax.xlane.f32.xlu0 %v2414_v21 }
 0x3f9   : > { %3519 = vrot.lane.b32.xlu1 %v5781_v9, %s5456_s0 }
 0x3fd   : > { %3671 = vrot.lane.b32.xlu1 %v5789_v11, %s5456_s0  ;;  %v5994_v11 = vpop.permute.xlu1 %2835 }
 0x401   : > { %v5996_v30 = vpop.permute.xlu1 %2987 }
 0x402   : > { %3443 = vrot.lane.b32.xlu0 %v5779_v8, %s5456_s0  ;;  %v2371_v26 = vpop.xlane.xlu0 %2370 }
 0x403   : > { %v2417_v27 = vsub.f32 %v5911_v32, %v2371_v26 }
 0x405   : > { %v2433_v28 = vmul.f32 1.442695, %v2417_v27  ;;  %v5998_v8 = vpop.permute.xlu1 %3063 }
 0x406   : > { %3595 = vrot.lane.b32.xlu0 %v5749_v61, %s5456_s0 }
 0x407   : > { %5301 = vpow2.f32 %v2433_v28 }
 0x409   : > { %v6000_v31 = vpop.permute.xlu1 %3215 }
 0x40d   : > { %v6002_v61 = vpop.permute.xlu1 %3367 }
 0x411   : > { %v5990_v29 = vpop.eup %5301 }
 0x412   : > { %v2465_v9 = vsel %vm1154_vm6, %v5990_v29, 0.0 }
 0x421   : > { %2466 = vadd.xlane.f32.xlu1 %v2465_v9 }
 0x459   : > { %v2374_v33 = vpop.xlane.xlu1 %2373 }
 0x45a   : > { %v2418_v32 = vsub.f32 %v5915_v35, %v2374_v33 }
 0x45c   : > { %v2435_v34 = vmul.f32 1.442695, %v2418_v32 }
 0x45d   : > { %v2377_v36 = vpop.xlane.xlu0 %2376 }
 0x45e   : > { %5303 = vpow2.f32 %v2435_v34  ;;  %v2419_v37 = vsub.f32 %v5919_v38, %v2377_v36 }
 0x460   : > { %v2437_v40 = vmul.f32 1.442695, %v2419_v37 }
 0x461   : > { %v2383_v41 = vpop.xlane.xlu1 %2382  ;;  %v2380_v42 = vpop.xlane.xlu0 %2379 }
 0x462   : > { %5305 = vpow2.f32 %v2437_v40  ;;  %v2421_v45 = vsub.f32 %v5925_v43, %v2383_v41  ;;  %v2420_v46 = vsub.f32 %v5921_v39, %v2380_v42 }
 0x464   : > { %v2441_v47 = vmul.f32 1.442695, %v2421_v45  ;;  %v2439_v48 = vmul.f32 1.442695, %v2420_v46 }
 0x465   : > { %v2389_v51 = vpop.xlane.xlu1 %2388  ;;  %v2386_v52 = vpop.xlane.xlu0 %2385 }
 0x466   : > { %5307 = vpow2.f32 %v2441_v47  ;;  %v2423_v35 = vsub.f32 %v5933_v49, %v2389_v51  ;;  %v2422_v53 = vsub.f32 %v5927_v44, %v2386_v52 }
 0x467   : > { %5309 = vpow2.f32 %v2439_v48 }
 0x468   : > { %v6010_v54 = vpop.eup %5303  ;;  %v2445_v38 = vmul.f32 1.442695, %v2423_v35  ;;  %v2443_v57 = vmul.f32 1.442695, %v2422_v53 }
 0x469   : > { %v2395_v58 = vpop.xlane.xlu1 %2394  ;;  %v2392_v59 = vpop.xlane.xlu0 %2391  ;;  %v2468_v43 = vsel %vm1154_vm6, %v6010_v54, 0.0 }
 0x46a   : > { %5311 = vpow2.f32 %v2445_v38  ;;  %v2425_v39 = vsub.f32 %v5941_v55, %v2395_v58  ;;  %v2424_v60 = vsub.f32 %v5935_v50, %v2392_v59  ;;  %2469 = vadd.xlane.f32.xlu0 %v2468_v43 }
 0x46b   : > { %5313 = vpow2.f32 %v2443_v57 }
 0x46c   : > { %v6016_v49 = vpop.eup %5305  ;;  %v2449_v44 = vmul.f32 1.442695, %v2425_v39  ;;  %v2447_v0 = vmul.f32 1.442695, %v2424_v60 }
 0x46d   : > { %v2401_v1 = vpop.xlane.xlu1 %2400  ;;  %v2398_v2 = vpop.xlane.xlu0 %2397  ;;  %v2471_v3 = vsel %vm1154_vm6, %v6016_v49, 0.0 }
 0x46e   : > { %5315 = vpow2.f32 %v2449_v44  ;;  %v2427_v6 = vsub.f32 %v5949_v62, %v2401_v1  ;;  %v2426_v7 = vsub.f32 %v5943_v56, %v2398_v2  ;;  %2472 = vadd.xlane.f32.xlu1 %v2471_v3 }
 0x46f   : > { %5317 = vpow2.f32 %v2447_v0 }
 0x470   : > { %v6022_v55 = vpop.eup %5307  ;;  %v2453_v50 = vmul.f32 1.442695, %v2427_v6  ;;  %v2451_v12 = vmul.f32 1.442695, %v2426_v7 }
 0x471   : > { %v6024_v14 = vpop.eup %5309  ;;  %v2407_v17 = vpop.xlane.xlu1 %2406  ;;  %v2477_v19 = vsel %vm1154_vm6, %v6022_v55, 0.0 }
 0x472   : > { %v2404_v18 = vpop.xlane.xlu0 %2403  ;;  %5319 = vpow2.f32 %v2453_v50  ;;  %v2429_v20 = vsub.f32 %v5957_v4, %v2407_v17  ;;  %2478 = vadd.xlane.f32.xlu1 %v2477_v19  ;;  %v2474_v56 = vsel %vm1154_vm6, %v6024_v14, 0.0 }
 0x473   : > { %v2428_v62 = vsub.f32 %v5951_v63, %v2404_v18  ;;  %5321 = vpow2.f32 %v2451_v12  ;;  %2475 = vadd.xlane.f32.xlu0 %v2474_v56 }
 0x474   : > { %v6032_v21 = vpop.eup %5311  ;;  %v2457_v26 = vmul.f32 1.442695, %v2429_v20 }
 0x475   : > { %v2455_v27 = vmul.f32 1.442695, %v2428_v62  ;;  %v6034_v28 = vpop.eup %5313  ;;  %v2413_v9 = vpop.xlane.xlu1 %2412  ;;  %v2483_v32 = vsel %vm1154_vm6, %v6032_v21, 0.0 }
 0x476   : > { %v2410_v33 = vpop.xlane.xlu0 %2409  ;;  %5323 = vpow2.f32 %v2457_v26  ;;  %v2431_v63 = vsub.f32 %v5965_v15, %v2413_v9  ;;  %2484 = vadd.xlane.f32.xlu1 %v2483_v32  ;;  %v2480_v34 = vsel %vm1154_vm6, %v6034_v28, 0.0 }
 0x477   : > { %v2430_v4 = vsub.f32 %v5959_v5, %v2410_v33  ;;  %5325 = vpow2.f32 %v2455_v27  ;;  %2481 = vadd.xlane.f32.xlu0 %v2480_v34 }
 0x478   : > { %v6042_v36 = vpop.eup %5315  ;;  %v2461_v37 = vmul.f32 1.442695, %v2431_v63 }
 0x479   : > { %v2459_v40 = vmul.f32 1.442695, %v2430_v4  ;;  %v6044_v41 = vpop.eup %5317  ;;  %v2489_v45 = vsel %vm1154_vm6, %v6042_v36, 0.0  ;;  %v6083_v44 = vpop.permute.xlu1 %3519 }
 0x47a   : > { %v2416_v42 = vpop.xlane.xlu0 %2415  ;;  %5327 = vpow2.f32 %v2461_v37  ;;  %2490 = vadd.xlane.f32.xlu1 %v2489_v45  ;;  %v2486_v5 = vsel %vm1154_vm6, %v6044_v41, 0.0 }
 0x47b   : > { %v2432_v15 = vsub.f32 %v5967_v16, %v2416_v42  ;;  %5329 = vpow2.f32 %v2459_v40  ;;  %2487 = vadd.xlane.f32.xlu0 %v2486_v5 }
 0x47c   : > { %v6051_v46 = vpop.eup %5319 }
 0x47d   : > { %v2463_v47 = vmul.f32 1.442695, %v2432_v15  ;;  %v6053_v48 = vpop.eup %5321  ;;  %v2495_v51 = vsel %vm1154_vm6, %v6051_v46, 0.0  ;;  %v6085_v0 = vpop.permute.xlu1 %3671 }
 0x47e   : > { %2496 = vadd.xlane.f32.xlu1 %v2495_v51  ;;  %v2492_v52 = vsel %vm1154_vm6, %v6053_v48, 0.0 }
 0x47f   : > { %5331 = vpow2.f32 %v2463_v47  ;;  %2493 = vadd.xlane.f32.xlu0 %v2492_v52 }
 0x480   : > { %v6059_v16 = vpop.eup %5323 }
 0x481   : > { %v6061_v35 = vpop.eup %5325  ;;  %v2501_v53 = vsel %vm1154_vm6, %v6059_v16, 0.0 }
 0x482   : > { %2502 = vadd.xlane.f32.xlu1 %v2501_v53  ;;  %v2498_v38 = vsel %vm1154_vm6, %v6061_v35, 0.0 }
 0x483   : > { %2499 = vadd.xlane.f32.xlu0 %v2498_v38 }
 0x484   : > { %v6067_v57 = vpop.eup %5327 }
 0x485   : > { %v6069_v58 = vpop.eup %5329  ;;  %v2507_v59 = vsel %vm1154_vm6, %v6067_v57, 0.0 }
 0x486   : > { %2508 = vadd.xlane.f32.xlu1 %v2507_v59  ;;  %v2504_v43 = vsel %vm1154_vm6, %v6069_v58, 0.0 }
 0x487   : > { %2505 = vadd.xlane.f32.xlu0 %v2504_v43 }
 0x489   : > { %v6075_v39 = vpop.eup %5331 }
 0x48a   : > { %v2510_v60 = vsel %vm1154_vm6, %v6075_v39, 0.0 }
 0x48b   : > { %2511 = vadd.xlane.f32.xlu0 %v2510_v60 }
 0x497   : > { %3823 = vrot.lane.b32.xlu1 %v5795_v13, %s5456_s0 }
 0x4a1   : > { %3747 = vrot.lane.b32.xlu0 %v5787_v10, %s5456_s0  ;;  %v6094_v10 = vpop.permute.xlu0 %3443 }
 0x4a5   : > { %v6096_v13 = vpop.permute.xlu0 %3595 }
 0x4ae   : > { %v2467_v1 = vpop.xlane.xlu1 %2466 }
 0x4af   : > { %5333 = vrcp.f32 %v2467_v1 }
 0x4b9   : > { %v5334_v2 = vpop.eup %5333 }
 0x4ba   : > { %v2514_v3 = vmul.f32 %v5334_v2, %v5990_v29 }
 0x4bc   : > { %5091 = vmatmul.mubr.msk.f32.vlgmr.msra.gmra.mrb[16].mxu0 %vm1154_vm6, %v2514_v3  ;;  %v2545_v6 = vpack.c.bf16 %v2514_v3, %v2514_v3 }
 0x4bd   : > { %5099 = vmatpush3.msra.mxu0 %v5994_v11  ;;  %5100 = vmatprep.mubr.msk.f32.mxu0 %vm5451_vm4, %v5450_v25 }
 0x4be   : > { %5108 = vmatprep.subr.mxu0 %v5450_v25  ;;  %2547 = vst.msk [vmem:[%s5678_s22] sm:$0xf] %vm2546_vm7, %v2545_v6  ;;  %vm2654_vm7 = vcmask 847616  }
 0x4f7   : > { %v2470_v7 = vpop.xlane.xlu0 %2469 }
 0x4f8   : > { %5335 = vrcp.f32 %v2470_v7 }
 0x4fb   : > { %v2473_v50 = vpop.xlane.xlu1 %2472 }
 0x4fc   : > { %5337 = vrcp.f32 %v2473_v50 }
 0x4ff   : > { %v2479_v29 = vpop.xlane.xlu1 %2478 }
 0x500   : > { %5339 = vrcp.f32 %v2479_v29  ;;  %v2476_v12 = vpop.xlane.xlu0 %2475 }
 0x501   : > { %5341 = vrcp.f32 %v2476_v12 }
 0x502   : > { %v5336_v17 = vpop.eup %5335 }
 0x503   : > { %v6099_v11 = vmul.f32 %v5336_v17, %v6010_v54  ;;  %v2485_v18 = vpop.xlane.xlu1 %2484 }
 0x504   : > { %5343 = vrcp.f32 %v2485_v18  ;;  %v2482_v19 = vpop.xlane.xlu0 %2481 }
 0x505   : > { %5345 = vrcp.f32 %v2482_v19  ;;  %5096 = vmatmul.mubr.msk.f32.vlgmr.msra.gmra.mrb[32].mxu1 %vm1154_vm6, %v6099_v11 }
 0x506   : > { %v5338_v20 = vpop.eup %5337  ;;  %5104 = vmatpush3.msra.mxu1 %v5975_v22  ;;  %5105 = vmatprep.mubr.msk.f32.mxu1 %vm5451_vm4, %v5450_v25 }
 0x507   : > { %v6107_v62 = vmul.f32 %v5338_v20, %v6016_v49  ;;  %v2491_v56 = vpop.xlane.xlu1 %2490  ;;  %5113 = vmatprep.subr.mxu1 %v5450_v25 }
 0x508   : > { %5347 = vrcp.f32 %v2491_v56  ;;  %v2488_v54 = vpop.xlane.xlu0 %2487  ;;  %v5289_v56 = vld [vmem:[%s5641_s1] sm:$0xff]  }
 0x509   : > { %5349 = vrcp.f32 %v2488_v54  ;;  %5101 = vmatmul.mubr.msk.f32.vlgmr.msra.gmra.mrb[18].mxu0 %vm1154_vm6, %v6107_v62  ;;  %v5290_v54 = vld [vmem:[%s5641_s1 + $0x8] sm:$0xff]  }
 0x50a   : > { %v5340_v26 = vpop.eup %5339  ;;  %5109 = vmatpush3.msra.mxu0 %v5996_v30  ;;  %5110 = vmatprep.mubr.msk.f32.mxu0 %vm5451_vm4, %v5450_v25 }
 0x50b   : > { %v5342_v22 = vpop.eup %5341  ;;  %v6116_v27 = vmul.f32 %v5340_v26, %v6022_v55  ;;  %v2497_v49 = vpop.xlane.xlu1 %2496  ;;  %5118 = vmatprep.subr.mxu0 %v5450_v25 }
 0x50c   : > { %v6120_v9 = vmul.f32 %v5342_v22, %v6024_v14  ;;  %5351 = vrcp.f32 %v2497_v49  ;;  %v2494_v33 = vpop.xlane.xlu0 %2493 }
 0x50d   : > { %5353 = vrcp.f32 %v2494_v33  ;;  %5111 = vmatmul.mubr.msk.f32.vlgmr.msra.gmra.mrb[20].mxu0 %vm1154_vm6, %v6116_v27 }
 0x50e   : > { %v5344_v30 = vpop.eup %5343  ;;  %5106 = vmatmul.mubr.msk.f32.vlgmr.msra.gmra.mrb[34].mxu1 %vm1154_vm6, %v6120_v9  ;;  %5119 = vmatpush3.msra.mxu0 %v5981_v23 }
 0x50f   : > { %v5346_v55 = vpop.eup %5345  ;;  %v6128_v32 = vmul.f32 %v5344_v30, %v6032_v21  ;;  %5114 = vmatpush3.msra.mxu1 %v5998_v8  ;;  %v2503_v14 = vpop.xlane.xlu1 %2502  ;;  %5115 = vmatprep.mubr.msk.f32.mxu1 %vm5451_vm4, %v5450_v25 }
 0x510   : > { %v6134_v63 = vmul.f32 %v5346_v55, %v6034_v28  ;;  %5355 = vrcp.f32 %v2503_v14  ;;  %v2500_v4 = vpop.xlane.xlu0 %2499  ;;  %5120 = vmatprep.mubr.msk.f32.mxu0 %vm5451_vm4, %v5450_v25  ;;  %5123 = vmatprep.subr.mxu1 %v5450_v25 }
 0x511   : > { %5357 = vrcp.f32 %v2500_v4  ;;  %5128 = vmatprep.subr.mxu0 %v5450_v25  ;;  %5121 = vmatmul.mubr.msk.f32.vlgmr.msra.gmra.mrb[22].mxu0 %vm1154_vm6, %v6128_v32 }
 0x512   : > { %v5348_v23 = vpop.eup %5347  ;;  %5116 = vmatmul.mubr.msk.f32.vlgmr.msra.gmra.mrb[36].mxu1 %vm1154_vm6, %v6134_v63  ;;  %5129 = vmatpush3.msra.mxu0 %v5985_v24 }
 0x513   : > { %v5350_v8 = vpop.eup %5349  ;;  %v6146_v21 = vmul.f32 %v5348_v23, %v6042_v36  ;;  %5124 = vmatpush3.msra.mxu1 %v6000_v31  ;;  %v2509_v28 = vpop.xlane.xlu1 %2508  ;;  %5125 = vmatprep.mubr.msk.f32.mxu1 %vm5451_vm4, %v5450_v25 }
 0x514   : > { %v6152_v34 = vmul.f32 %v5350_v8, %v6044_v41  ;;  %5359 = vrcp.f32 %v2509_v28  ;;  %v2506_v37 = vpop.xlane.xlu0 %2505  ;;  %5130 = vmatprep.mubr.msk.f32.mxu0 %vm5451_vm4, %v5450_v25  ;;  %5133 = vmatprep.subr.mxu1 %v5450_v25 }
 0x515   : > { %5361 = vrcp.f32 %v2506_v37  ;;  %5138 = vmatprep.subr.mxu0 %v5450_v25  ;;  %5131 = vmatmul.mubr.msk.f32.vlgmr.msra.gmra.mrb[24].mxu0 %vm1154_vm6, %v6146_v21 }
 0x516   : > { %v5352_v24 = vpop.eup %5351  ;;  %5126 = vmatmul.mubr.msk.f32.vlgmr.msra.gmra.mrb[38].mxu1 %vm1154_vm6, %v6152_v34  ;;  %5139 = vmatpush3.msra.mxu0 %v6094_v10 }
 0x517   : > { %v5354_v31 = vpop.eup %5353  ;;  %v6164_v36 = vmul.f32 %v5352_v24, %v6051_v46  ;;  %5134 = vmatpush3.msra.mxu1 %v6002_v61  ;;  %5135 = vmatprep.mubr.msk.f32.mxu1 %vm5451_vm4, %v5450_v25  ;;  %v3824_v52 = vpop.permute.xlu1 %3823 }
 0x518   : > { %v6170_v40 = vmul.f32 %v5354_v31, %v6053_v48  ;;  %v2512_v41 = vpop.xlane.xlu0 %2511  ;;  %5140 = vmatprep.mubr.msk.f32.mxu0 %vm5451_vm4, %v5450_v25  ;;  %5143 = vmatprep.subr.mxu1 %v5450_v25 }
 0x519   : > { %5363 = vrcp.f32 %v2512_v41  ;;  %5148 = vmatprep.subr.mxu0 %v5450_v25  ;;  %5141 = vmatmul.mubr.msk.f32.vlgmr.msra.gmra.mrb[26].mxu0 %vm1154_vm6, %v6164_v36 }
 0x51a   : > { %v5356_v42 = vpop.eup %5355  ;;  %5136 = vmatmul.mubr.msk.f32.vlgmr.msra.gmra.mrb[40].mxu1 %vm1154_vm6, %v6170_v40  ;;  %5149 = vmatpush3.msra.mxu0 %v6096_v13 }
 0x51b   : > { %v5358_v61 = vpop.eup %5357  ;;  %v6182_v45 = vmul.f32 %v5356_v42, %v6059_v16  ;;  %5144 = vmatpush3.msra.mxu1 %v6083_v44  ;;  %5145 = vmatprep.mubr.msk.f32.mxu1 %vm5451_vm4, %v5450_v25 }
 0x51c   : > { %v6188_v15 = vmul.f32 %v5358_v61, %v6061_v35  ;;  %v3748_v5 = vpop.permute.xlu0 %3747  ;;  %5150 = vmatprep.mubr.msk.f32.mxu0 %vm5451_vm4, %v5450_v25  ;;  %5153 = vmatprep.subr.mxu1 %v5450_v25 }
 0x51d   : > { %5158 = vmatprep.subr.mxu0 %v5450_v25  ;;  %5151 = vmatmul.mubr.msk.f32.vlgmr.msra.gmra.mrb[28].mxu0 %vm1154_vm6, %v6182_v45 }
 0x51e   : > { %v5360_v46 = vpop.eup %5359  ;;  %5146 = vmatmul.mubr.msk.f32.vlgmr.msra.gmra.mrb[42].mxu1 %vm1154_vm6, %v6188_v15  ;;  %5159 = vmatpush3.msra.mxu0 %v3748_v5 }
 0x51f   : > { %v5362_v47 = vpop.eup %5361  ;;  %v6199_v48 = vmul.f32 %v5360_v46, %v6067_v57  ;;  %5154 = vmatpush3.msra.mxu1 %v6085_v0  ;;  %5155 = vmatprep.mubr.msk.f32.mxu1 %vm5451_vm4, %v5450_v25 }
 0x520   : > { %v6205_v51 = vmul.f32 %v5362_v47, %v6069_v58  ;;  %5160 = vmatprep.mubr.msk.f32.mxu0 %vm5451_vm4, %v5450_v25  ;;  %5163 = vmatprep.subr.mxu1 %v5450_v25 }
 0x521   : > { %5161 = vmatmul.mubr.msk.f32.vlgmr.msra.gmra.mrb[30].mxu0 %vm1154_vm6, %v6199_v48  ;;  %5168 = vmatprep.subr.bf16.mxu0 %v5289_v56 }
 0x522   : > { %5156 = vmatmul.mubr.msk.f32.vlgmr.msra.gmra.mrb[44].mxu1 %vm1154_vm6, %v6205_v51  ;;  %5169 = vmatpush3.bf16.msra.mxu0 %v5289_v56 }
 0x523   : > { %v5364_v16 = vpop.eup %5363  ;;  %5164 = vmatpush3.msra.mxu1 %v3824_v52  ;;  %5165 = vmatprep.mubr.msk.f32.mxu1 %vm5451_vm4, %v5450_v25  ;;  %vm2636_vm4 = vcmask 716416  }
 0x524   : > { %v6217_v35 = vmul.f32 %v5364_v16, %v6075_v39  ;;  %5170 = vmatprep.subr.bf16.mxu0 %v5290_v54 }
 0x526   : > { %5166 = vmatmul.mubr.msk.f32.vlgmr.msra.gmra.mrb[46].mxu1 %vm1154_vm6, %v6217_v35  ;;  %5171 = vmatpush3.bf16.msra.mxu0 %v5290_v54 }
 0x58f   : > { %v2755_v53 = vpop.f32.mrb[16].mxu0 }
 0x590   : > { %3899 = vst.msk [vmem:[#allocation3] sm:$0xff] %vm1154_vm6, %v2755_v53  ;;  %v5092_v38 = vpop.f32.mrb[17].mxu0 }
 0x5d8   : > { %v2831_v57 = vpop.f32.mrb[32].mxu1 }
 0x5d9   : > { %3907 = vrot.lane.b32.xlu0 %v2831_v57, %s5457_s19  ;;  %v5097_v58 = vpop.f32.mrb[33].mxu1 }
 0x5da   : > { %v4828_v58 = vld [vmem:[%s6485_s2] ss:$0 sm:$0xff] }
 0x5dc   : > { %v2907_v59 = vpop.f32.mrb[18].mxu0 }
 0x5dd   : > { %v5102_v43 = vpop.f32.mrb[19].mxu0  ;;  %3928 = vrot.lane.b32.xlu0 %v2907_v59, %s5458_s20 }
 0x5e0   : > { %v3059_v25 = vpop.f32.mrb[20].mxu0 }
 0x5e1   : > { %v2983_v39 = vpop.f32.mrb[34].mxu1  ;;  %3900 = vst.msk [vmem:[#allocation3 + $0x8] sm:$0xff] %vm1154_vm6, %v3059_v25  ;;  %v5112_v60 = vpop.f32.mrb[21].mxu0 }
 0x5e2   : > { %3949 = vrot.lane.b32.xlu0 %v2983_v39, %s5459_s26  ;;  %v5107_v44 = vpop.f32.mrb[35].mxu1 }
 0x5e4   : > { %v3211_v0 = vpop.f32.mrb[22].mxu0 }
 0x5e5   : > { %v3135_v1 = vpop.f32.mrb[36].mxu1  ;;  %v5122_v2 = vpop.f32.mrb[23].mxu0 }
 0x5e6   : > { %3909 = vrot.lane.b32.xlu1 %v3135_v1, %s5457_s19  ;;  %v5117_v3 = vpop.f32.mrb[37].mxu1  ;;  %v5381_v1 = vld [vmem:[#allocation2] sm:$0xff] }
 0x5e8   : > { %v3363_v6 = vpop.f32.mrb[24].mxu0 }
 0x5e9   : > { %v3287_v10 = vpop.f32.mrb[38].mxu1  ;;  %3901 = vst.msk [vmem:[#allocation3 + $0x10] sm:$0xff] %vm1154_vm6, %v3363_v6  ;;  %v5132_v13 = vpop.f32.mrb[25].mxu0 }
 0x5ea   : > { %3930 = vrot.lane.b32.xlu1 %v3211_v0, %s5458_s20  ;;  %v5127_v7 = vpop.f32.mrb[39].mxu1 }
 0x5eb   : > { %v5383_v7 = vld [vmem:[#allocation2 + $0x10] sm:$0xff] }
 0x5ec   : > { %v3515_v50 = vpop.f32.mrb[26].mxu0 }
 0x5ed   : > { %v3439_v29 = vpop.f32.mrb[40].mxu1  ;;  %v5142_v12 = vpop.f32.mrb[27].mxu0 }
 0x5ee   : > { %3951 = vrot.lane.b32.xlu1 %v3287_v10, %s5459_s26  ;;  %3911 = vrot.lane.b32.xlu0 %v3439_v29, %s5457_s19  ;;  %v5137_v17 = vpop.f32.mrb[41].mxu1  ;;  %v5382_v10 = vld [vmem:[#allocation2 + $0x8] sm:$0xff] }
 0x5ef   : > { %v5384_v17 = vld [vmem:[#allocation2 + $0x18] sm:$0xff] }
 0x5f0   : > { %v3667_v18 = vpop.f32.mrb[28].mxu0 }
 0x5f1   : > { %v3591_v19 = vpop.f32.mrb[42].mxu1  ;;  %3902 = vst.msk [vmem:[#allocation3 + $0x18] sm:$0xff] %vm1154_vm6, %v3667_v18  ;;  %v5152_v20 = vpop.f32.mrb[29].mxu0  ;;  %vm2645_vm6 = vcmask 782016  }
 0x5f2   : > { %3932 = vrot.lane.b32.xlu0 %v3515_v50, %s5458_s20  ;;  %v5147_v26 = vpop.f32.mrb[43].mxu1 }
 0x5f4   : > { %v3819_v22 = vpop.f32.mrb[30].mxu0 }
 0x5f5   : > { %v3743_v49 = vpop.f32.mrb[44].mxu1  ;;  %v5162_v33 = vpop.f32.mrb[31].mxu0 }
 0x5f6   : > { %3953 = vrot.lane.b32.xlu0 %v3591_v19, %s5459_s26  ;;  %3913 = vrot.lane.b32.xlu1 %v3743_v49, %s5457_s19  ;;  %v5157_v30 = vpop.f32.mrb[45].mxu1 }
 0x5f9   : > { %v3895_v55 = vpop.f32.mrb[46].mxu1 }
 0x5fa   : > { %3934 = vrot.lane.b32.xlu1 %v3819_v22, %s5458_s20  ;;  %v5167_v14 = vpop.f32.mrb[47].mxu1 }
 0x5fe   : > { %3955 = vrot.lane.b32.xlu1 %v3895_v55, %s5459_s26 }
 0x64b   : > { %v3908_v4 = vpop.permute.xlu0 %3907 }
 0x64c   : > { %3920 = vst.msk [vmem:[#allocation3] sm:$0xff] %vm3919_vm8, %v3908_v4 }
 0x64f   : > { %v3929_v23 = vpop.permute.xlu0 %3928 }
 0x650   : > { %3941 = vst.msk [vmem:[#allocation3] sm:$0xff] %vm3940_vm9, %v3929_v23 }
 0x654   : > { %v3950_v8 = vpop.permute.xlu0 %3949 }
 0x655   : > { %3962 = vst.msk [vmem:[#allocation3] sm:$0xff] %vm3961_vm10, %v3950_v8 }
 0x658   : > { %v3910_v28 = vpop.permute.xlu1 %3909 }
 0x659   : > { %3921 = vst.msk [vmem:[#allocation3 + $0x8] sm:$0xff] %vm3919_vm8, %v3910_v28 }
 0x65c   : > { %v3931_v37 = vpop.permute.xlu1 %3930  ;;  %v3966_v5 = vld [vmem:[#allocation3] sm:$0xff] }
 0x65d   : > { %3942 = vst.msk [vmem:[#allocation3 + $0x8] sm:$0xff] %vm3940_vm9, %v3931_v37 }
 0x660   : > { %v3952_v24 = vpop.permute.xlu1 %3951  ;;  %v3912_v31 = vpop.permute.xlu0 %3911 }
 0x661   : > { %3963 = vst.msk [vmem:[#allocation3 + $0x8] sm:$0xff] %vm3961_vm10, %v3952_v24 }
 0x662   : > { %3922 = vst.msk [vmem:[#allocation3 + $0x10] sm:$0xff] %vm3919_vm8, %v3912_v31 }
 0x664   : > { %v3933_v41 = vpop.permute.xlu0 %3932 }
 0x665   : > { %3943 = vst.msk [vmem:[#allocation3 + $0x10] sm:$0xff] %vm3940_vm9, %v3933_v41 }
 0x668   : > { %v3954_v42 = vpop.permute.xlu0 %3953  ;;  %v3914_v61 = vpop.permute.xlu1 %3913  ;;  %v3967_v46 = vld [vmem:[#allocation3 + $0x8] sm:$0xff] }
 0x669   : > { %3964 = vst.msk [vmem:[#allocation3 + $0x10] sm:$0xff] %vm3961_vm10, %v3954_v42  ;;  %v3974_v47 = vpack.c.bf16 %v3967_v46, %v3966_v5  ;;  %v5291_v5 = vld [vmem:[%s5662_s27] sm:$0xff]   ;;  %v5292_v46 = vld [vmem:[%s5662_s27 + $0x8] sm:$0xff]  }
 0x66a   : > { %3923 = vst.msk [vmem:[#allocation3 + $0x18] sm:$0xff] %vm3919_vm8, %v3914_v61  ;;  %5176 = vmatprep.subr.bf16.mxu1 %v5291_v5  ;;  %vm2663_vm8 = vcmask 913216  }
 0x66b   : > { %5172 = vmatprep.mubr.msk.bf16.mxu0 %vm915_vm5, %v3974_v47  ;;  %5177 = vmatpush3.bf16.msra.mxu1 %v5291_v5  ;;  %v5293_v47 = vld [vmem:[%s5667_s23] sm:$0xff]  }
 0x66c   : > { %v3935_v52 = vpop.permute.xlu1 %3934  ;;  %5178 = vmatprep.subr.bf16.mxu1 %v5292_v46  ;;  %5184 = vmatprep.subr.bf16.mxu0 %v5293_v47 }
 0x66d   : > { %3944 = vst.msk [vmem:[#allocation3 + $0x18] sm:$0xff] %vm3940_vm9, %v3935_v52  ;;  %v5294_v52 = vld [vmem:[%s5667_s23 + $0x8] sm:$0xff]   ;;  %vm2672_vm9 = vcmask 978816  }
 0x66f   : > { %5179 = vmatpush3.bf16.msra.mxu1 %v5292_v46 }
 0x670   : > { %v3956_v16 = vpop.permute.xlu1 %3955  ;;  %v3968_v53 = vld [vmem:[#allocation3 + $0x10] sm:$0xff] }
 0x671   : > { %3965 = vst.msk [vmem:[#allocation3 + $0x18] sm:$0xff] %vm3961_vm10, %v3956_v16  ;;  %v5295_v16 = vld [vmem:[%s5667_s23 + $0x10] sm:$0xff]   ;;  %vm2681_vm10 = vcmask 1044416  }
 0x678   : > { %v3969_v38 = vld [vmem:[#allocation3 + $0x18] sm:$0xff] }
 0x679   : > { %v3975_v57 = vpack.c.bf16 %v3969_v38, %v3968_v53  ;;  %v5296_v53 = vld [vmem:[%s5667_s23 + $0x18] sm:$0xff]   ;;  %v5297_v38 = vld [vmem:[%s5667_s23 + $0x20] sm:$0xff]  }
 0x67b   : > { %5173 = vmatmul.mubr.msk.bf16.vlgmr.msra.gmra.mrb[32].mxu0 %vm915_vm5, %v3975_v57  ;;  %v5298_v57 = vld [vmem:[%s5667_s23 + $0x28] sm:$0xff]  }
 0x67c   : > { %5185 = vmatpush3.bf16.msra.mxu0 %v5293_v47 }
 0x67d   : > { %5186 = vmatprep.subr.bf16.mxu0 %v5294_v52 }
 0x680   : > { %5187 = vmatpush3.bf16.msra.mxu0 %v5294_v52 }
 0x681   : > { %5188 = vmatprep.subr.bf16.mxu0 %v5295_v16 }
 0x684   : > { %5189 = vmatpush3.bf16.msra.mxu0 %v5295_v16 }
 0x685   : > { %5190 = vmatprep.subr.bf16.mxu0 %v5296_v53 }
 0x688   : > { %5191 = vmatpush3.bf16.msra.mxu0 %v5296_v53 }
 0x689   : > { %5192 = vmatprep.subr.bf16.mxu0 %v5297_v38 }
 0x68c   : > { %5193 = vmatpush3.bf16.msra.mxu0 %v5297_v38 }
 0x68d   : > { %5194 = vmatprep.subr.bf16.mxu0 %v5298_v57 }
 0x690   : > { %5195 = vmatpush3.bf16.msra.mxu0 %v5298_v57 }
 0x74e   : > { %v5174_v59 = vpop.f32.mrb[32].mxu0 }
 0x74f   : > { %v4035_v43 = vpop.f32.mrb[33].mxu0  ;;  %v4044_v25 = vadd.f32 %v5174_v59, %v4828_v58 }
 0x750   : > { %v4036_v39 = vadd.f32 %v4828_v58, %v4035_v43  ;;  %v5175_v60 = vpop.f32.mrb[34].mxu0 }
 0x751   : > { %v4038_v44 = vpop.f32.mrb[35].mxu0  ;;  %v4047_v3 = vadd.f32 %v5175_v60, %v4828_v58  ;;  %v4052_v50 = vadd.f32 %v5383_v7, %v4044_v25 }
 0x752   : > { %v4039_v0 = vadd.f32 %v4828_v58, %v4038_v44  ;;  %v4050_v2 = vadd.f32 %v5381_v1, %v4036_v39 }
 0x753   : > { %v4062_v12 = vsel %vm915_vm5, %v4052_v50, 0.0  ;;  %v4053_v18 = vadd.f32 %v5384_v17, %v4047_v3 }
 0x754   : > { %v4056_v6 = vsel %vm915_vm5, %v4050_v2, 0.0  ;;  %v4051_v13 = vadd.f32 %v5382_v10, %v4039_v0 }
 0x755   : > { %4057 = vadd.xlane.f32.xlu0 %v4056_v6  ;;  %v4065_v19 = vsel %vm915_vm5, %v4053_v18, 0.0 }
 0x756   : > { %v4059_v29 = vsel %vm915_vm5, %v4051_v13, 0.0 }
 0x757   : > { %4060 = vadd.xlane.f32.xlu1 %v4059_v29 }
 0x759   : > { %4063 = vadd.xlane.f32.xlu0 %v4062_v12 }
 0x75d   : > { %4066 = vadd.xlane.f32.xlu0 %v4065_v19 }
 0x7e2   : > { %v4058_v20 = vpop.xlane.xlu0 %4057 }
 0x7e3   : > { %v4069_v56 = vmul.f32 0.03125, %v4058_v20 }
 0x7e4   : > { %v4061_v54 = vpop.xlane.xlu1 %4060 }
 0x7e5   : > { %v6262_v26 = vsub.f32 %v4050_v2, %v4069_v56  ;;  %v4070_v22 = vmul.f32 0.03125, %v4061_v54 }
 0x7e6   : > { %v4064_v49 = vpop.xlane.xlu0 %4063 }
 0x7e7   : > { %v4074_v33 = vsub.f32 %v4051_v13, %v4070_v22  ;;  %v4071_v30 = vmul.f32 0.03125, %v4064_v49  ;;  %v4077_v55 = vmul.f32 %v6262_v26, %v6262_v26  ;;  %v4833_v13 = vld [vmem:[%s6486_s13] ss:$0 sm:$0xff] }
 0x7e9   : > { %v6266_v14 = vsub.f32 %v4052_v50, %v4071_v30  ;;  %v4081_v4 = vsel %vm915_vm5, %v4077_v55, 0.0  ;;  %v4078_v23 = vmul.f32 %v4074_v33, %v4074_v33 }
 0x7ea   : > { %4082 = vadd.xlane.f32.xlu1 %v4081_v4  ;;  %v4067_v8 = vpop.xlane.xlu0 %4066 }
 0x7eb   : > { %v4072_v28 = vmul.f32 0.03125, %v4067_v8  ;;  %v4084_v37 = vsel %vm915_vm5, %v4078_v23, 0.0  ;;  %v4079_v24 = vmul.f32 %v6266_v14, %v6266_v14  ;;  %v5299_v8 = vld [vmem:[%s5667_s23 + $0x30] sm:$0xff]  }
 0x7ec   : > { %4085 = vadd.xlane.f32.xlu0 %v4084_v37  ;;  %5196 = vmatprep.subr.bf16.mxu0 %v5299_v8 }
 0x7ed   : > { %v4076_v31 = vsub.f32 %v4053_v18, %v4072_v28  ;;  %v4087_v41 = vsel %vm915_vm5, %v4079_v24, 0.0  ;;  %v4834_v18 = vld [vmem:[%s6487_s24] ss:$0 sm:$0xff]  ;;  %5197 = vmatpush3.bf16.msra.mxu0 %v5299_v8 }
 0x7ee   : > { %4088 = vadd.xlane.f32.xlu1 %v4087_v41 }
 0x7ef   : > { %v4080_v42 = vmul.f32 %v4076_v31, %v4076_v31 }
 0x7f1   : > { %v4090_v61 = vsel %vm915_vm5, %v4080_v42, 0.0 }
 0x7f2   : > { %4091 = vadd.xlane.f32.xlu0 %v4090_v61 }
 0x877   : > { %v4083_v58 = vpop.xlane.xlu1 %4082 }
 0x878   : > { %v4093_v59 = vmul.f32 0.03125, %v4083_v58 }
 0x879   : > { %v4086_v43 = vpop.xlane.xlu0 %4085 }
 0x87a   : > { %v4097_v25 = vadd.f32 1e-05, %v4093_v59  ;;  %v4094_v39 = vmul.f32 0.03125, %v4086_v43 }
 0x87b   : > { %v4089_v60 = vpop.xlane.xlu1 %4088 }
 0x87c   : > { %5365 = vrsqrt.f32 %v4097_v25  ;;  %v4098_v44 = vadd.f32 1e-05, %v4094_v39  ;;  %v4095_v0 = vmul.f32 0.03125, %v4089_v60 }
 0x87e   : > { %5367 = vrsqrt.f32 %v4098_v44  ;;  %v4099_v1 = vadd.f32 1e-05, %v4095_v0  ;;  %v4858_v0 = vpack.c.bf16 %v6099_v11, %v6099_v11  ;;  %v4863_v11 = vpack.c.bf16 %v6128_v32, %v6128_v32 }
 0x87f   : > { %v4092_v2 = vpop.xlane.xlu0 %4091  ;;  %v4866_v32 = vpack.c.bf16 %v6170_v40, %v6170_v40 }
 0x880   : > { %5369 = vrsqrt.f32 %v4099_v1  ;;  %v4096_v3 = vmul.f32 0.03125, %v4092_v2  ;;  %v4860_v1 = vpack.c.bf16 %v6120_v9, %v6120_v9  ;;  %v4861_v2 = vpack.c.bf16 %v6116_v27, %v6116_v27 }
 0x881   : > { %v4865_v27 = vpack.c.bf16 %v6146_v21, %v6146_v21  ;;  %v4867_v9 = vpack.c.bf16 %v6164_v36, %v6164_v36  ;;  %v4868_v21 = vpack.c.bf16 %v6188_v15, %v6188_v15 }
 0x882   : > { %v4100_v6 = vadd.f32 1e-05, %v4096_v3  ;;  %v4859_v3 = vpack.c.bf16 %v6107_v62, %v6107_v62  ;;  %v4864_v62 = vpack.c.bf16 %v6152_v34, %v6152_v34 }
 0x884   : > { %5371 = vrsqrt.f32 %v4100_v6  ;;  %v4862_v6 = vpack.c.bf16 %v6134_v63, %v6134_v63  ;;  %v4869_v63 = vpack.c.bf16 %v6182_v45, %v6182_v45 }
 0x886   : > { %v5366_v10 = vpop.eup %5365 }
 0x887   : > { %v4105_v7 = vmul.f32 %v5366_v10, %v6262_v26 }
 0x888   : > { %v5368_v50 = vpop.eup %5367 }
 0x889   : > { %v4106_v29 = vmul.f32 %v5368_v50, %v4074_v33  ;;  %v4115_v12 = vmul.f32 %v4833_v13, %v4105_v7 }
 0x88a   : > { %v5370_v17 = vpop.eup %5369 }
 0x88b   : > { %v4107_v19 = vmul.f32 %v5370_v17, %v6266_v14  ;;  %v4116_v20 = vmul.f32 %v4833_v13, %v4106_v29  ;;  %v4125_v56 = vadd.f32 %v4834_v18, %v4115_v12  ;;  %v5300_v14 = vld [vmem:[%s5667_s23 + $0x38] sm:$0xff]   ;;  %s5460_s23 = smov 32  }
 0x88c   : > { %5198 = vmatprep.subr.bf16.mxu0 %v5300_v14 }
 0x88d   : > { %v4126_v54 = vadd.f32 %v4834_v18, %v4116_v20  ;;  %v4117_v49 = vmul.f32 %v4833_v13, %v4107_v19  ;;  %5199 = vmatpush3.bf16.msra.mxu0 %v5300_v14 }
 0x88e   : > { %v5372_v22 = vpop.eup %5371 }
 0x88f   : > { %v4108_v30 = vmul.f32 %v5372_v22, %v4076_v31  ;;  %v4133_v26 = vpack.c.bf16 %v4126_v54, %v4125_v56  ;;  %v4127_v33 = vadd.f32 %v4834_v18, %v4117_v49 }
 0x891   : > { %v4118_v55 = vmul.f32 %v4833_v13, %v4108_v30  ;;  %5180 = vmatprep.mubr.msk.bf16.mxu1 %vm915_vm5, %v4133_v26 }
 0x893   : > { %v4128_v4 = vadd.f32 %v4834_v18, %v4118_v55 }
 0x895   : > { %v4134_v23 = vpack.c.bf16 %v4128_v4, %v4127_v33 }
 0x897   : > { %5181 = vmatmul.mubr.msk.bf16.vlgmr.msra.gmra.mrb[48].mxu1 %vm915_vm5, %v4134_v23 }
 0x96a   : > { %v5182_v28 = vpop.f32.mrb[48].mxu1 }
 0x96b   : > { %v4187_v37 = vpop.f32.mrb[49].mxu1  ;;  %v4204_v41 = vmax.f32 %v5182_v28, 0.0 }
 0x96c   : > { %v5183_v24 = vpop.f32.mrb[50].mxu1  ;;  %v4202_v61 = vmax.f32 %v4187_v37, 0.0 }
 0x96d   : > { %v4205_v31 = vmax.f32 %v5183_v24, 0.0  ;;  %v4190_v42 = vpop.f32.mrb[51].mxu1  ;;  %v4871_v24 = vpack.c.bf16 %v6199_v48, %v6199_v48 }
 0x96e   : > { %v4203_v5 = vmax.f32 %v4190_v42, 0.0 }
 0x96f   : > { %v4223_v46 = vpack.c.bf16 %v4205_v31, %v4204_v41 }
 0x970   : > { %v4222_v47 = vpack.c.bf16 %v4203_v5, %v4202_v61  ;;  %v4870_v61 = vpack.c.bf16 %v6205_v51, %v6205_v51  ;;  %v4872_v5 = vpack.c.bf16 %v6217_v35, %v6217_v35 }
 0x972   : > { %5200 = vmatprep.mubr.bf16.mxu0 %v4222_v47 }
 0x973   : > { %5201 = vmatmul.mubr.bf16.vlgmr.msra.gmra.mrb[36].mxu0 %v4223_v46 }
 0xa46   : > { %v5202_v52 = vpop.f32.mrb[36].mxu0 }
 0xa47   : > { %v4323_v16 = vadd.f32 %v5202_v52, %v4127_v33  ;;  %v4306_v53 = vpop.f32.mrb[37].mxu0 }
 0xa48   : > { %v5203_v38 = vpop.f32.mrb[38].mxu0  ;;  %v4321_v57 = vadd.f32 %v4306_v53, %v4125_v56 }
 0xa49   : > { %v4309_v58 = vpop.f32.mrb[39].mxu0  ;;  %v4333_v59 = vsel %vm915_vm5, %v4323_v16, 0.0  ;;  %v4324_v25 = vadd.f32 %v5203_v38, %v4128_v4 }
 0xa4a   : > { %v4322_v43 = vadd.f32 %v4309_v58, %v4126_v54  ;;  %4334 = vadd.xlane.f32.xlu1 %v4333_v59  ;;  %v4327_v60 = vsel %vm915_vm5, %v4321_v57, 0.0 }
 0xa4b   : > { %v4336_v44 = vsel %vm915_vm5, %v4324_v25, 0.0 }
 0xa4c   : > { %v4330_v39 = vsel %vm915_vm5, %v4322_v43, 0.0 }
 0xa4d   : > { %4331 = vadd.xlane.f32.xlu0 %v4330_v39 }
 0xa4e   : > { %4328 = vadd.xlane.f32.xlu1 %v4327_v60 }
 0xa51   : > { %4337 = vadd.xlane.f32.xlu0 %v4336_v44 }
 0xa5f   : > { %2552 = vrot.lane.b32.xlu1 %v4858_v0, %s5457_s19  ;;  %s5463_s19 = smov 56   ;;  %v4848_v0 = vld [vmem:[%s6489_s14] ss:$0 sm:$0xff] }
 0xa63   : > { %2570 = vrot.lane.b32.xlu1 %v4860_v1, %s5459_s26  ;;  %s5465_s26 = smov 72  }
 0xa67   : > { %2579 = vrot.lane.b32.xlu1 %v4861_v2, %s5460_s23  ;;  %2561 = vrot.lane.b32.xlu0 %v4859_v3, %s5458_s20  ;;  %s5464_s20 = smov 80  }
 0xa6b   : > { %2597 = vrot.lane.b32.xlu1 %v4863_v11, %s5461_s25  ;;  %2588 = vrot.lane.b32.xlu0 %v4862_v6, %s5462_s30 }
 0xa6f   : > { %2615 = vrot.lane.b32.xlu1 %v4865_v27, %s5456_s0  ;;  %2606 = vrot.lane.b32.xlu0 %v4864_v62, %s5463_s19  ;;  %s5466_s0 = smov 88  }
 0xa73   : > { %2633 = vrot.lane.b32.xlu1 %v4867_v9, %s5464_s20  ;;  %2624 = vrot.lane.b32.xlu0 %v4866_v32, %s5465_s26 }
 0xa77   : > { %2651 = vrot.lane.b32.xlu1 %v4869_v63, %s5455_s3  ;;  %2642 = vrot.lane.b32.xlu0 %v4868_v21, %s5466_s0 }
 0xad7   : > { %v4335_v34 = vpop.xlane.xlu1 %4334 }
 0xad8   : > { %v4341_v36 = vmul.f32 0.03125, %v4335_v34 }
 0xada   : > { %v6331_v10 = vsub.f32 %v4323_v16, %v4341_v36  ;;  %v4332_v40 = vpop.xlane.xlu0 %4331 }
 0xadb   : > { %v4329_v13 = vpop.xlane.xlu1 %4328  ;;  %v4340_v29 = vmul.f32 0.03125, %v4332_v40 }
 0xadc   : > { %v4339_v7 = vmul.f32 0.03125, %v4329_v13  ;;  %v4349_v50 = vmul.f32 %v6331_v10, %v6331_v10 }
 0xadd   : > { %v6341_v20 = vsub.f32 %v4322_v43, %v4340_v29 }
 0xade   : > { %v6335_v45 = vsub.f32 %v4321_v57, %v4339_v7  ;;  %v4338_v15 = vpop.xlane.xlu0 %4337  ;;  %v4357_v12 = vsel %vm915_vm5, %v4349_v50, 0.0 }
 0xadf   : > { %v4342_v17 = vmul.f32 0.03125, %v4338_v15  ;;  %4358 = vadd.xlane.f32.xlu1 %v4357_v12  ;;  %v2553_v18 = vpop.permute.xlu1 %2552  ;;  %v4348_v55 = vmul.f32 %v6341_v20, %v6341_v20 }
 0xae0   : > { %2556 = vst.msk [vmem:[%s5678_s22] sm:$0xf] %vm2555_vm11, %v2553_v18  ;;  %v4347_v19 = vmul.f32 %v6335_v45, %v6335_v45 }
 0xae1   : > { %v6343_v56 = vsub.f32 %v4324_v25, %v4342_v17  ;;  %v4354_v23 = vsel %vm915_vm5, %v4348_v55, 0.0 }
 0xae2   : > { %v2562_v54 = vpop.permute.xlu0 %2561  ;;  %v4351_v22 = vsel %vm915_vm5, %v4347_v19, 0.0 }
 0xae3   : > { %2565 = vst.msk [vmem:[%s5678_s22] sm:$0xf] %vm2564_vm12, %v2562_v54  ;;  %4352 = vadd.xlane.f32.xlu1 %v4351_v22  ;;  %v2571_v49 = vpop.permute.xlu1 %2570  ;;  %v4350_v30 = vmul.f32 %v6343_v56, %v6343_v56 }
 0xae4   : > { %2574 = vst.msk [vmem:[%s5678_s22] sm:$0xf] %vm2573_vm13, %v2571_v49 }
 0xae5   : > { %v4360_v26 = vsel %vm915_vm5, %v4350_v30, 0.0 }
 0xae6   : > { %4361 = vadd.xlane.f32.xlu0 %v4360_v26  ;;  %v2589_v33 = vpop.permute.xlu0 %2588 }
 0xae7   : > { %v2580_v4 = vpop.permute.xlu1 %2579 }
 0xae8   : > { %2583 = vst.msk [vmem:[%s5678_s22] sm:$0xf] %vm2582_vm14, %v2580_v4 }
 0xae9   : > { %2592 = vst.msk [vmem:[%s5678_s22] sm:$0xf] %vm2591_vm15, %v2589_v33 }
 0xaea   : > { %4355 = vadd.xlane.f32.xlu0 %v4354_v23  ;;  %v2607_v8 = vpop.permute.xlu0 %2606 }
 0xaeb   : > { %v2598_v14 = vpop.permute.xlu1 %2597 }
 0xaec   : > { %2601 = vst.msk [vmem:[%s5678_s22] sm:$0xf] %vm2600_vm0, %v2598_v14 }
 0xaed   : > { %2610 = vst.msk [vmem:[%s5678_s22] sm:$0xf] %vm2609_vm1, %v2607_v8 }
 0xaee   : > { %v2625_v28 = vpop.permute.xlu0 %2624 }
 0xaef   : > { %v2616_v37 = vpop.permute.xlu1 %2615 }
 0xaf0   : > { %2619 = vst.msk [vmem:[%s5678_s22] sm:$0xf] %vm2618_vm2, %v2616_v37 }
 0xaf1   : > { %2628 = vst.msk [vmem:[%s5678_s22] sm:$0xf] %vm2627_vm3, %v2625_v28 }
 0xaf2   : > { %v2643_v31 = vpop.permute.xlu0 %2642 }
 0xaf3   : > { %v2634_v41 = vpop.permute.xlu1 %2633 }
 0xaf4   : > { %2637 = vst.msk [vmem:[%s5678_s22] sm:$0xf] %vm2636_vm4, %v2634_v41  ;;  %2669 = vrot.lane.b32.xlu1 %v4871_v24, %s5454_s17  ;;  %s6488_s17 = scalar_lea.vmem %s6443_s9, %s5618_s28  ;;  %s6490_s28 = sld [smem:[#allocation6_spill]] }
 0xaf5   : > { %2646 = vst.msk [vmem:[%s5678_s22] sm:$0xf] %vm2645_vm6, %v2643_v31  ;;  %v4847_v25 = vld [vmem:[%s6488_s17] ss:$0 sm:$0xff] }
 0xaf7   : > { %v2652_v42 = vpop.permute.xlu1 %2651 }
 0xaf8   : > { %2655 = vst.msk [vmem:[%s5678_s22] sm:$0xf] %vm2654_vm7, %v2652_v42 }
 0xafa   : > { %p4849_p13 = scmp.ne.s32.totalorder %s6490_s28, 1 }
 0xafb   : > { %s6491_s27 = sld [smem:[#allocation20_spill]] (!%p4849_p13)  ;;  %s6492_s16 = sld [smem:[#allocation21_spill]] (!%p4849_p13)  ;;  %vm4490_vm11 = vcmask (!%p4849_p13), 523520   ;;  %vm4496_vm12 = vcmask (!%p4849_p13), 785920   ;;  %vm4502_vm13 = vcmask (!%p4849_p13), 1048320  }
 0xafc   : > { %s5467_s4 = smov (!%p4849_p13), 32   ;;  %s5468_s24 = smov (!%p4849_p13), 64  }
 0xafd   : > { %s5469_s23 = smov (!%p4849_p13), 96  }
 0xb00   : > { %2660 = vrot.lane.b32.xlu0 %v4870_v61, %s5452_s21 }
 0xb04   : > { %2678 = vrot.lane.b32.xlu0 %v4872_v5, %s5453_s18 }
 0xb6c   : > { %v4359_v48 = vpop.xlane.xlu1 %4358 }
 0xb6d   : > { %v4365_v46 = vmul.f32 0.03125, %v4359_v48 }
 0xb6f   : > { %v4369_v47 = vadd.f32 1e-05, %v4365_v46 }
 0xb70   : > { %v4353_v52 = vpop.xlane.xlu1 %4352 }
 0xb71   : > { %5373 = vrsqrt.f32 %v4369_v47  ;;  %v4363_v16 = vmul.f32 0.03125, %v4353_v52 }
 0xb73   : > { %v4367_v53 = vadd.f32 1e-05, %v4363_v16  ;;  %v4362_v38 = vpop.xlane.xlu0 %4361 }
 0xb74   : > { %v4366_v57 = vmul.f32 0.03125, %v4362_v38  ;;  %v2670_v44 = vpop.permute.xlu1 %2669  ;;  %v4850_v38 = vld [vmem:[%s6491_s27] ss:$0 sm:$0xff] (!%p4849_p13) }
 0xb75   : > { %5375 = vrsqrt.f32 %v4367_v53 }
 0xb76   : > { %v4370_v51 = vadd.f32 1e-05, %v4366_v57 }
 0xb77   : > { %v4356_v58 = vpop.xlane.xlu0 %4355 }
 0xb78   : > { %5377 = vrsqrt.f32 %v4370_v51  ;;  %v4364_v35 = vmul.f32 0.03125, %v4356_v58  ;;  %v4851_v51 = vld [vmem:[%s6492_s16] ss:$0 sm:$0xff] (!%p4849_p13) }
 0xb7a   : > { %v4368_v59 = vadd.f32 1e-05, %v4364_v35 }
 0xb7b   : > { %v5374_v43 = vpop.eup %5373  ;;  %v2661_v39 = vpop.permute.xlu0 %2660 }
 0xb7c   : > { %v4377_v60 = vmul.f32 %v5374_v43, %v6331_v10  ;;  %5379 = vrsqrt.f32 %v4368_v59  ;;  %2664 = vst.msk [vmem:[%s5678_s22] sm:$0xf] %vm2663_vm8, %v2661_v39 }
 0xb7d   : > { %2673 = vst.msk [vmem:[%s5678_s22] sm:$0xf] %vm2672_vm9, %v2670_v44 }
 0xb7e   : > { %v4387_v1 = vmul.f32 %v4847_v25, %v4377_v60 }
 0xb7f   : > { %v5376_v2 = vpop.eup %5375  ;;  %v2679_v3 = vpop.permute.xlu0 %2678 }
 0xb80   : > { %v4397_v11 = vadd.f32 %v4848_v0, %v4387_v1  ;;  %v4375_v6 = vmul.f32 %v5376_v2, %v6335_v45  ;;  %2682 = vst.msk [vmem:[%s5678_s22] sm:$0xf] %vm2681_vm10, %v2679_v3 }
 0xb82   : > { %v5378_v27 = vpop.eup %5377  ;;  %4401 = vst.msk [vmem:[#allocation2 + $0x10] sm:$0xff] %vm915_vm5, %v4397_v11  ;;  %v4385_v62 = vmul.f32 %v4847_v25, %v4375_v6  ;;  %v4415_v50 = vsel (!%p4849_p13), %vm915_vm5, %v4397_v11, 0.0 }
 0xb83   : > { %v4378_v9 = vmul.f32 %v5378_v27, %v6343_v56 }
 0xb84   : > { %v4395_v32 = vadd.f32 %v4848_v0, %v4385_v62 }
 0xb85   : > { %v4388_v63 = vmul.f32 %v4847_v25, %v4378_v9 }
 0xb86   : > { %v5380_v21 = vpop.eup %5379  ;;  %4399 = vst.msk [vmem:[#allocation2] sm:$0xff] %vm915_vm5, %v4395_v32  ;;  %v4409_v29 = vsel (!%p4849_p13), %vm915_vm5, %v4395_v32, 0.0 }
 0xb87   : > { %v4398_v34 = vadd.f32 %v4848_v0, %v4388_v63  ;;  %v4376_v36 = vmul.f32 %v5380_v21, %v6341_v20  ;;  %4406 = sbr.rel (%p4849_p13) target bundleno = 3397 (0xd45), region = 126 }
 0xb89   : > { %4402 = vst.msk [vmem:[#allocation2 + $0x18] sm:$0xff] %vm915_vm5, %v4398_v34  ;;  %v4386_v10 = vmul.f32 %v4847_v25, %v4376_v36  ;;  %v4418_v7 = vsel (!%p4849_p13), %vm915_vm5, %v4398_v34, 0.0 }
 0xb8a   : > { %4419 = vadd.xlane.f32.xlu1 (!%p4849_p13), %v4418_v7 }
 0xb8b   : > { %v4396_v40 = vadd.f32 %v4848_v0, %v4386_v10 }
 0xb8d   : > { %4400 = vst.msk [vmem:[#allocation2 + $0x8] sm:$0xff] %vm915_vm5, %v4396_v40  ;;  %v4412_v13 = vsel (!%p4849_p13), %vm915_vm5, %v4396_v40, 0.0 }
 0xb8e   : > { %4413 = vadd.xlane.f32.xlu0 %v4412_v13  ;;  %4410 = vadd.xlane.f32.xlu1 %v4409_v29 }
 0xb92   : > { %4416 = vadd.xlane.f32.xlu0 %v4415_v50 }
 0xc17   : > { %v4420_v15 = vpop.xlane.xlu1 %4419 }
 0xc18   : > { %v4424_v17 = vmul.f32 0.03125, %v4420_v15 }
 0xc1a   : > { %v4428_v19 = vsub.f32 %v4398_v34, %v4424_v17 }
 0xc1b   : > { %v4414_v45 = vpop.xlane.xlu0 %4413  ;;  %v4411_v56 = vpop.xlane.xlu1 %4410 }
 0xc1c   : > { %v4422_v12 = vmul.f32 0.03125, %v4414_v45  ;;  %v4421_v49 = vmul.f32 0.03125, %v4411_v56  ;;  %v4432_v30 = vmul.f32 %v4428_v19, %v4428_v19 }
 0xc1e   : > { %v4426_v18 = vsub.f32 %v4396_v40, %v4422_v12  ;;  %v4425_v33 = vsub.f32 %v4395_v32, %v4421_v49  ;;  %v4442_v4 = vsel %vm915_vm5, %v4432_v30, 0.0 }
 0xc1f   : > { %v4417_v20 = vpop.xlane.xlu0 %4416 }
 0xc20   : > { %v4423_v54 = vmul.f32 0.03125, %v4417_v20  ;;  %v4430_v22 = vmul.f32 %v4426_v18, %v4426_v18  ;;  %v4429_v8 = vmul.f32 %v4425_v33, %v4425_v33 }
 0xc22   : > { %v4427_v26 = vsub.f32 %v4397_v11, %v4423_v54  ;;  %v4436_v55 = vsel %vm915_vm5, %v4430_v22, 0.0  ;;  %v4433_v28 = vsel %vm915_vm5, %v4429_v8, 0.0 }
 0xc23   : > { %4437 = vadd.xlane.f32.xlu0 %v4436_v55 }
 0xc24   : > { %v4431_v23 = vmul.f32 %v4427_v26, %v4427_v26 }
 0xc26   : > { %v4439_v14 = vsel %vm915_vm5, %v4431_v23, 0.0 }
 0xc27   : > { %4443 = vadd.xlane.f32.xlu0 %v4442_v4  ;;  %4440 = vadd.xlane.f32.xlu1 %v4439_v14 }
 0xc2b   : > { %4434 = vadd.xlane.f32.xlu1 %v4433_v28 }
 0xcb0   : > { %v4438_v37 = vpop.xlane.xlu0 %4437 }
 0xcb1   : > { %v4446_v24 = vmul.f32 0.03125, %v4438_v37 }
 0xcb3   : > { %v4450_v41 = vadd.f32 1e-05, %v4446_v24 }
 0xcb4   : > { %v4444_v31 = vpop.xlane.xlu0 %4443  ;;  %v4441_v42 = vpop.xlane.xlu1 %4440 }
 0xcb5   : > { %5385 = vrsqrt.f32 %v4450_v41  ;;  %v4448_v61 = vmul.f32 0.03125, %v4444_v31  ;;  %v4447_v5 = vmul.f32 0.03125, %v4441_v42 }
 0xcb7   : > { %v4452_v48 = vadd.f32 1e-05, %v4448_v61  ;;  %v4451_v46 = vadd.f32 1e-05, %v4447_v5 }
 0xcb8   : > { %v4435_v47 = vpop.xlane.xlu1 %4434 }
 0xcb9   : > { %5387 = vrsqrt.f32 %v4452_v48  ;;  %v4445_v52 = vmul.f32 0.03125, %v4435_v47 }
 0xcba   : > { %5389 = vrsqrt.f32 %v4451_v46 }
 0xcbb   : > { %v4449_v16 = vadd.f32 1e-05, %v4445_v52 }
 0xcbd   : > { %5391 = vrsqrt.f32 %v4449_v16 }
 0xcbf   : > { %v5386_v53 = vpop.eup %5385 }
 0xcc0   : > { %v4458_v57 = vmul.f32 %v5386_v53, %v4426_v18 }
 0xcc2   : > { %v4468_v58 = vmul.f32 %v4850_v38, %v4458_v57 }
 0xcc3   : > { %v5388_v35 = vpop.eup %5387 }
 0xcc4   : > { %v5390_v59 = vpop.eup %5389  ;;  %v4478_v43 = vadd.f32 %v4851_v51, %v4468_v58  ;;  %v4460_v25 = vmul.f32 %v5388_v35, %v4428_v19 }
 0xcc5   : > { %v4459_v39 = vmul.f32 %v5390_v59, %v4427_v26 }
 0xcc6   : > { %v4482_v60 = vmax.f32 %v4478_v43, 0.0  ;;  %v4470_v1 = vmul.f32 %v4850_v38, %v4460_v25 }
 0xcc7   : > { %v5392_v44 = vpop.eup %5391  ;;  %v4469_v0 = vmul.f32 %v4850_v38, %v4459_v39 }
 0xcc8   : > { %4487 = vrot.lane.b32.xlu0 %v4482_v60, %s5467_s4  ;;  %v4457_v2 = vmul.f32 %v5392_v44, %v4425_v33  ;;  %v4480_v27 = vadd.f32 %v4851_v51, %v4470_v1 }
 0xcc9   : > { %v4479_v3 = vadd.f32 %v4851_v51, %v4469_v0 }
 0xcca   : > { %v4467_v11 = vmul.f32 %v4850_v38, %v4457_v2  ;;  %v4484_v32 = vmax.f32 %v4480_v27, 0.0 }
 0xccb   : > { %v4483_v6 = vmax.f32 %v4479_v3, 0.0 }
 0xccc   : > { %v4477_v62 = vadd.f32 %v4851_v51, %v4467_v11 }
 0xccd   : > { %4493 = vrot.lane.b32.xlu1 %v4483_v6, %s5468_s24 }
 0xcce   : > { %v4481_v9 = vmax.f32 %v4477_v62, 0.0 }
 0xcd0   : > { %4485 = vst.msk [vmem:[%s5672_s29] sm:$0xff] %vm915_vm5, %v4481_v9 }
 0xcd1   : > { %4499 = vrot.lane.b32.xlu1 %v4484_v32, %s5469_s23 }
 0xd3a   : > { %v4488_v63 = vpop.permute.xlu0 %4487 }
 0xd3b   : > { %4491 = vst.msk [vmem:[%s5672_s29] sm:$0xff] %vm4490_vm11, %v4488_v63 }
 0xd3f   : > { %v4494_v21 = vpop.permute.xlu1 %4493 }
 0xd40   : > { %4497 = vst.msk [vmem:[%s5672_s29] sm:$0xff] %vm4496_vm12, %v4494_v21 }
 0xd43   : > { %v4500_v34 = vpop.permute.xlu1 %4499 }
 0xd44   : > { %4503 = vst.msk [vmem:[%s5672_s29] sm:$0xff] %vm4502_vm13, %v4500_v34 }
 0xd45 PF: > { %s6493_s25 = sld [smem:[#allocation9_spill]]  ;;  %s6494_s21 = sld [smem:[#allocation5_spill]] }
 0xd46   : > { %s6495_s22 = sld [smem:[#allocation12_spill]]  ;;  %s6496_s23 = sld [smem:[#allocation7_spill]] }
 0xd47   : > { %s6497_s24 = sld [smem:[#allocation8_spill]]  ;;  %s6499_s26 = sld [smem:[#allocation11_spill]] }
 0xd4b   : > { %s27_s27 = sadd.s32 1, %s6493_s25   ;;  %s6498_s25 = sld [smem:[#allocation10_spill]] }
 0xd4c   : > { %p24_p0 = scmp.ge.s32.totalorder %s27_s27, 6  }
 0xd4e   :  { %26 = sbr.rel (!%p24_p0) target bundleno = 14 (0xe), region = 203 }

</bundles_post_ra>
